<compile_context>
chip_gen: v6e
topology: v6e:2x2x1
jax: 0.10.0
libtpu: 0.0.40
codegen_flags: <defaults>
</compile_context>

<pallas_src>
import functools

import jax
import jax.numpy as jnp
from jax.experimental import pallas as pl
from jax.experimental.pallas import tpu as pltpu

LANE = 128


def _round_up(x, m):
    return (x + m - 1) // m * m


# ----------------------------- Pallas kernels --------------------------------

def _matmul_bias_swish_kernel(x_ref, w_ref, b_ref, o_ref):
    # fused conv-matmul (bf16 in, f32 accumulate) + bias + Swish
    acc = jnp.dot(x_ref[...], w_ref[...], preferred_element_type=jnp.float32)
    acc = acc + b_ref[...]
    o_ref[...] = (acc * jax.nn.sigmoid(acc)).astype(o_ref.dtype)


def matmul_bias_swish(x, w, b, *, tile_m=128):
    """(M,K)bf16 @ (K,N)bf16 + b, Swish -> (M,N)bf16.  Gridded over M.

    tile_m: raise to 256-512 for large M (sweep; keep double-buffered tiles
    well under the v7x 64 MiB VMEM budget)."""
    M, K = x.shape
    Kw, N = w.shape
    assert K == Kw, (K, Kw)
    tile_m = min(tile_m, _round_up(M, 8))          # small layers: one tile
    Mp = _round_up(M, tile_m)
    if Mp != M:
        x = jnp.pad(x, ((0, Mp - M), (0, 0)))
    grid = (Mp // tile_m,)
    cost = pl.CostEstimate(
        flops=2 * Mp * K * N,
        transcendentals=Mp * N,
        bytes_accessed=Mp * K * 2 + K * N * 2 + N * 4 + Mp * N * 2)
    out = pl.pallas_call(
        _matmul_bias_swish_kernel,
        out_shape=jax.ShapeDtypeStruct((Mp, N), jnp.bfloat16),
        grid_spec=pltpu.PrefetchScalarGridSpec(
            num_scalar_prefetch=0,
            grid=grid,
            in_specs=[pl.BlockSpec((tile_m, K), lambda i: (i, 0)),
                      pl.BlockSpec((K, N), lambda i: (0, 0)),
                      pl.BlockSpec((1, N), lambda i: (0, 0))],
            out_specs=pl.BlockSpec((tile_m, N), lambda i: (i, 0))),
        compiler_params=pltpu.CompilerParams(
            dimension_semantics=("parallel",),
            vmem_limit_bytes=32 * 1024 * 1024),
        cost_estimate=cost,
    )(x, w, b)
    return out[:M] if Mp != M else out


def _tail_kernel(x_ref, w_ref, b_ref, pool_ref, wfc_ref, bfc_ref, o_ref):
    # conv5 (as matmul) + bias + Swish
    h = jnp.dot(x_ref[...], w_ref[...], preferred_element_type=jnp.float32)
    h = h + b_ref[...]
    h = h * jax.nn.sigmoid(h)
    # adaptive_avg_pool2d(., 1): pooling matrix averages rows of each batch item
    pooled = jnp.dot(pool_ref[...], h, preferred_element_type=jnp.float32)
    # Linear (classes padded to 128 lanes; padded-lane bias = -1e30) + logsumexp
    logits = jnp.dot(pooled, wfc_ref[...],
                     preferred_element_type=jnp.float32) + bfc_ref[...]
    m = jnp.max(logits, axis=1, keepdims=True)
    o_ref[...] = m + jnp.log(jnp.sum(jnp.exp(logits - m), axis=1, keepdims=True))


def tail_fused(x5, w5, b5, pool, wfc, bfc, batch):
    M5p, K = x5.shape
    _, C = w5.shape
    _, N = wfc.shape
    return pl.pallas_call(
        _tail_kernel,
        out_shape=jax.ShapeDtypeStruct((batch, 1), jnp.float32),
        in_specs=[pl.BlockSpec((M5p, K), lambda: (0, 0)),
                  pl.BlockSpec((K, C), lambda: (0, 0)),
                  pl.BlockSpec((1, C), lambda: (0, 0)),
                  pl.BlockSpec((batch, M5p), lambda: (0, 0)),
                  pl.BlockSpec((C, N), lambda: (0, 0)),
                  pl.BlockSpec((1, N), lambda: (0, 0))],
        out_specs=pl.BlockSpec((batch, 1), lambda: (0, 0)),
        compiler_params=pltpu.CompilerParams(
            vmem_limit_bytes=32 * 1024 * 1024),
    )(x5, w5, b5, pool, wfc, bfc)


# -------------------------------- JAX glue ------------------------------------

def im2col_nhwc(x, k, stride, pad):
    """x: (B, H, W, C) -> (B*Ho*Wo, k*k*C) patches (kh-major, then kw, then C)."""
    B, H, W, C = x.shape
    xp = jnp.pad(x, ((0, 0), (pad, pad), (pad, pad), (0, 0)))
    Ho = (H + 2 * pad - k) // stride + 1
    Wo = (W + 2 * pad - k) // stride + 1
    cols = []
    for kh in range(k):
        for kw in range(k):
            cols.append(xp[:, kh:kh + stride * Ho:stride,
                              kw:kw + stride * Wo:stride, :])
    patches = jnp.concatenate(cols, axis=-1)               # (B, Ho, Wo, k*k*C)
    return patches.reshape(B * Ho * Wo, k * k * C), Ho, Wo


# ------------------------------ ShallowCNN ------------------------------------

def conv_configs(hidden_features=32):
    c1, c2, c3 = hidden_features, hidden_features * 2, hidden_features * 4
    # (C_out, C_in, kernel, stride, padding) -- mirrors the PyTorch module
    return [(c1, 1, 5, 2, 4),
            (c2, c1, 3, 2, 1),
            (c3, c2, 3, 2, 1),
            (c3, c3, 3, 2, 1),
            (c3, c3, 3, 2, 1)]


def init_params(key, hidden_features=32, num_classes=42):
    """Torch-layout parameters (OIHW conv weights, (num_classes, C) fc weight)."""
    cfgs = conv_configs(hidden_features)
    keys = jax.random.split(key, len(cfgs) + 1)
    convs = []
    for i, (co, ci, k, s, p) in enumerate(cfgs):
        fan_in = ci * k * k
        w = jax.random.normal(keys[i], (co, ci, k, k), jnp.float32) / jnp.sqrt(fan_in)
        b = jnp.zeros((co,), jnp.float32) + 0.01 * i
        convs.append((w, b))
    c3 = cfgs[-1][0]
    fc_w = jax.random.normal(keys[-1], (num_classes, c3), jnp.float32) / jnp.sqrt(c3)
    fc_b = jnp.linspace(-0.1, 0.1, num_classes).astype(jnp.float32)
    return {"convs": convs, "fc_w": fc_w, "fc_b": fc_b}, cfgs


def prepare_params(params, cfgs):
    """Pad channels to 128 lanes, convert conv weights to (k*k*Cin_p, Cout_p)
    bf16 matrices matching the NHWC im2col layout, pad FC for a masked
    (exact) logsumexp over 128 lanes."""
    conv_w, conv_b = [], []
    prev_cout_p = None
    for i, ((w, b), (co, ci, k, _s, _p)) in enumerate(zip(params["convs"], cfgs)):
        cout_p = _round_up(co, LANE)
        cin_p = ci if i == 0 else prev_cout_p       # image input: pad K instead
        wp = jnp.pad(w, ((0, cout_p - co), (0, cin_p - ci), (0, 0), (0, 0)))
        w_mat = wp.transpose(2, 3, 1, 0).reshape(k * k * cin_p, cout_p)
        Kp = _round_up(w_mat.shape[0], 32)          # sublane-friendly K (25->32)
        w_mat = jnp.pad(w_mat, ((0, Kp - w_mat.shape[0]), (0, 0)))
        conv_w.append(w_mat.astype(jnp.bfloat16))
        conv_b.append(jnp.pad(b, (0, cout_p - co)).reshape(1, cout_p)
                      .astype(jnp.float32))
        prev_cout_p = cout_p
    ncls = params["fc_b"].shape[0]
    ncls_p = _round_up(ncls, LANE)
    c3 = params["fc_w"].shape[1]
    wfc = jnp.pad(params["fc_w"].T,
                  ((0, prev_cout_p - c3), (0, ncls_p - ncls))).astype(jnp.float32)
    bfc = jnp.full((1, ncls_p), -1e30, jnp.float32)
    bfc = bfc.at[0, :ncls].set(params["fc_b"])
    return {"conv_w": conv_w, "conv_b": conv_b, "fc_w": wfc, "fc_b": bfc}


def _pool_matrix(batch, m5, m5p, hw5):
    """(batch, m5p) matrix averaging the hw5 spatial rows of each batch item."""
    rows = jnp.arange(m5p)
    row_batch = rows // hw5
    valid = rows < m5
    mask = (row_batch[None, :] == jnp.arange(batch)[:, None]) & valid[None, :]
    return mask.astype(jnp.float32) / float(hw5)


def shallow_cnn_forward(x_nchw, mats, cfgs):
    """Equivalent of ShallowCNN.forward(x, y=None): logsumexp logits, shape (B,)."""
    x = jnp.transpose(x_nchw, (0, 2, 3, 1)).astype(jnp.bfloat16)   # NHWC once
    B = x.shape[0]
    n_layers = len(cfgs)
    # conv1..conv4: gridded, fused matmul + bias + Swish kernels (NHWC, bf16)
    for i in range(n_layers - 1):
        (_, _, k, s, p) = cfgs[i]
        Xp, Ho, Wo = im2col_nhwc(x, k, s, p)
        Kp = mats["conv_w"][i].shape[0]
        if Xp.shape[1] != Kp:
            Xp = jnp.pad(Xp, ((0, 0), (0, Kp - Xp.shape[1])))
        Y = matmul_bias_swish(Xp, mats["conv_w"][i], mats["conv_b"][i])
        x = Y.reshape(B, Ho, Wo, Y.shape[-1])
    # fused tail: conv5 + adaptive_avg_pool2d(1) + Linear + logsumexp
    (_, _, k, s, p) = cfgs[-1]
    X5, Ho5, Wo5 = im2col_nhwc(x, k, s, p)
    Kp = mats["conv_w"][-1].shape[0]
    if X5.shape[1] != Kp:
        X5 = jnp.pad(X5, ((0, 0), (0, Kp - X5.shape[1])))
    M5 = X5.shape[0]
    M5p = _round_up(M5, 8)
    if M5p != M5:
        X5 = jnp.pad(X5, ((0, M5p - M5), (0, 0)))
    pool = _pool_matrix(B, M5, M5p, Ho5 * Wo5)
    out = tail_fused(X5, mats["conv_w"][-1], mats["conv_b"][-1], pool,
                     mats["fc_w"], mats["fc_b"], B)
    return out.reshape(B)


# ---------------------------- pure-JAX reference -------------------------------

def ref_forward(x, params, cfgs):
    for (w, b), (_co, _ci, _k, s, p) in zip(params["convs"], cfgs):
        x = jax.lax.conv_general_dilated(
            x, w, (s, s), [(p, p), (p, p)],
            dimension_numbers=("NCHW", "OIHW", "NCHW"),
            precision=jax.lax.Precision.HIGHEST)
        x = x + b.reshape(1, -1, 1, 1)
        x = x * jax.nn.sigmoid(x)
    pooled = jnp.mean(x, axis=(2, 3))
    logits = pooled @ params["fc_w"].T + params["fc_b"]
    return jax.nn.logsumexp(logits, axis=1)


# ----------------------------------- main --------------------------------------

if __name__ == "__main__":
    key = jax.random.PRNGKey(0)
    k_in, k_par = jax.random.split(key)

    # Input: batch=2, 1 channel (Conv2d(1, ...)), 16x16 spatial.
    x = jax.random.normal(k_in, (2, 1, 16, 16), jnp.float32)
    params, cfgs = init_params(k_par, hidden_features=32, num_classes=42)
    mats = prepare_params(params, cfgs)

    fwd = jax.jit(functools.partial(shallow_cnn_forward, cfgs=cfgs))
    out = jax.block_until_ready(fwd(x, mats))

    ref = jax.block_until_ready(ref_forward(x, params, cfgs))
    assert out.shape == (2,), out.shape
    # bf16 MXU inputs with f32 accumulation -> slightly looser tolerance.
    assert bool(jnp.allclose(out, ref, rtol=2e-2, atol=2e-2)), (out, ref)

    print("KERNEL_OK")
</pallas_src>

<mosaic_0001>
module attributes {stable_mosaic.version = 11 : i64} {
  func.func @_matmul_bias_swish_kernel(%arg0: i32, %arg1: memref<128x32xbf16, #tpu.memory_space<vmem>>, %arg2: memref<32x128xbf16, #tpu.memory_space<vmem>>, %arg3: memref<1x128xf32, #tpu.memory_space<vmem>>, %arg4: memref<128x128xbf16, #tpu.memory_space<vmem>>) attributes {dimension_semantics = [#tpu.dimension_semantics<parallel>], iteration_bounds = array<i64: 2>, scalar_prefetch = 0 : i64, scratch_operands = 0 : i64, tpu.core_type = #tpu.core_type<tc>, window_params = [{transform_indices = @transform_0, window_bounds = array<i64: 128, 32>}, {pipeline_mode = #tpu.pipeline_mode<synchronous>, transform_indices = @transform_1, window_bounds = array<i64: 32, 128>}, {pipeline_mode = #tpu.pipeline_mode<synchronous>, transform_indices = @transform_2, window_bounds = array<i64: 1, 128>}, {transform_indices = @transform_3, window_bounds = array<i64: 128, 128>}]} {
    %c0 = arith.constant 0 : index
    %c0_0 = arith.constant 0 : index
    %0 = vector.load %arg1[%c0, %c0_0] : memref<128x32xbf16, #tpu.memory_space<vmem>>, vector<128x32xbf16>
    %c0_1 = arith.constant 0 : index
    %c0_2 = arith.constant 0 : index
    %1 = vector.load %arg2[%c0_1, %c0_2] : memref<32x128xbf16, #tpu.memory_space<vmem>>, vector<32x128xbf16>
    %cst = arith.constant dense<0.000000e+00> : vector<128x128xf32>
    %2 = tpu.matmul %0, %1, %cst {dimension_numbers = #tpu.dot_dimension_numbers<[1], [0], [0], [1], [0, 0, 1, 1], [], []>} : vector<128x32xbf16>, vector<32x128xbf16>, vector<128x128xf32> -> vector<128x128xf32>
    %c0_3 = arith.constant 0 : index
    %c0_4 = arith.constant 0 : index
    %3 = vector.load %arg3[%c0_3, %c0_4] : memref<1x128xf32, #tpu.memory_space<vmem>>, vector<1x128xf32>
    %4 = vector.broadcast %3 : vector<1x128xf32> to vector<128x128xf32>
    %5 = arith.addf %2, %4 : vector<128x128xf32>
    %6 = arith.negf %5 : vector<128x128xf32>
    %7 = math.exp %6 : vector<128x128xf32>
    %cst_5 = arith.constant 1.000000e+00 : f32
    %8 = vector.broadcast %cst_5 : f32 to vector<128x128xf32>
    %9 = arith.addf %8, %7 : vector<128x128xf32>
    %10 = arith.divf %8, %9 : vector<128x128xf32>
    %11 = arith.mulf %5, %10 : vector<128x128xf32>
    %12 = arith.truncf %11 : vector<128x128xf32> to vector<128x128xbf16>
    %c0_6 = arith.constant 0 : index
    %c0_7 = arith.constant 0 : index
    %13 = vector.load %arg4[%c0_6, %c0_7] : memref<128x128xbf16, #tpu.memory_space<vmem>>, vector<128x128xbf16>
    tpu.vector_store %arg4[%c0_6, %c0_7], %12 {strides = array<i32>} : memref<128x128xbf16, #tpu.memory_space<vmem>>, vector<128x128xbf16>,
    return
  }
  func.func @transform_0(%arg0: i32) -> (i32, i32) {
    %c0_i32 = arith.constant 0 : i32
    %c0_i32_0 = arith.constant 0 : i32
    return %arg0, %c0_i32 : i32, i32
  }
  func.func @transform_1(%arg0: i32) -> (i32, i32) {
    %c0_i32 = arith.constant 0 : i32
    %c0_i32_0 = arith.constant 0 : i32
    %c0_i32_1 = arith.constant 0 : i32
    return %c0_i32, %c0_i32_0 : i32, i32
  }
  func.func @transform_2(%arg0: i32) -> (i32, i32) {
    %c0_i32 = arith.constant 0 : i32
    %c0_i32_0 = arith.constant 0 : i32
    %c0_i32_1 = arith.constant 0 : i32
    return %c0_i32, %c0_i32_0 : i32, i32
  }
  func.func @transform_3(%arg0: i32) -> (i32, i32) {
    %c0_i32 = arith.constant 0 : i32
    %c0_i32_0 = arith.constant 0 : i32
    return %arg0, %c0_i32 : i32, i32
  }
}

module attributes {stable_mosaic.version = 11 : i64} {
  func.func @_matmul_bias_swish_kernel(%arg0: i32, %arg1: memref<56x1152xbf16, #tpu.memory_space<vmem>>, %arg2: memref<1152x128xbf16, #tpu.memory_space<vmem>>, %arg3: memref<1x128xf32, #tpu.memory_space<vmem>>, %arg4: memref<56x128xbf16, #tpu.memory_space<vmem>>) attributes {dimension_semantics = [#tpu.dimension_semantics<parallel>], iteration_bounds = array<i64: 1>, scalar_prefetch = 0 : i64, scratch_operands = 0 : i64, tpu.core_type = #tpu.core_type<tc>, window_params = [{transform_indices = @transform_0, window_bounds = array<i64: 56, 1152>}, {pipeline_mode = #tpu.pipeline_mode<synchronous>, transform_indices = @transform_1, window_bounds = array<i64: 1152, 128>}, {pipeline_mode = #tpu.pipeline_mode<synchronous>, transform_indices = @transform_2, window_bounds = array<i64: 1, 128>}, {transform_indices = @transform_3, window_bounds = array<i64: 56, 128>}]} {
    %c0 = arith.constant 0 : index
    %c0_0 = arith.constant 0 : index
    %0 = vector.load %arg1[%c0, %c0_0] : memref<56x1152xbf16, #tpu.memory_space<vmem>>, vector<56x1152xbf16>
    %c0_1 = arith.constant 0 : index
    %c0_2 = arith.constant 0 : index
    %1 = vector.load %arg2[%c0_1, %c0_2] : memref<1152x128xbf16, #tpu.memory_space<vmem>>, vector<1152x128xbf16>
    %cst = arith.constant dense<0.000000e+00> : vector<56x128xf32>
    %2 = tpu.matmul %0, %1, %cst {dimension_numbers = #tpu.dot_dimension_numbers<[1], [0], [0], [1], [0, 0, 1, 1], [], []>} : vector<56x1152xbf16>, vector<1152x128xbf16>, vector<56x128xf32> -> vector<56x128xf32>
    %c0_3 = arith.constant 0 : index
    %c0_4 = arith.constant 0 : index
    %3 = vector.load %arg3[%c0_3, %c0_4] : memref<1x128xf32, #tpu.memory_space<vmem>>, vector<1x128xf32>
    %4 = vector.broadcast %3 : vector<1x128xf32> to vector<56x128xf32>
    %5 = arith.addf %2, %4 : vector<56x128xf32>
    %6 = arith.negf %5 : vector<56x128xf32>
    %7 = math.exp %6 : vector<56x128xf32>
    %cst_5 = arith.constant 1.000000e+00 : f32
    %8 = vector.broadcast %cst_5 : f32 to vector<56x128xf32>
    %9 = arith.addf %8, %7 : vector<56x128xf32>
    %10 = arith.divf %8, %9 : vector<56x128xf32>
    %11 = arith.mulf %5, %10 : vector<56x128xf32>
    %12 = arith.truncf %11 : vector<56x128xf32> to vector<56x128xbf16>
    %c0_6 = arith.constant 0 : index
    %c0_7 = arith.constant 0 : index
    %13 = vector.load %arg4[%c0_6, %c0_7] : memref<56x128xbf16, #tpu.memory_space<vmem>>, vector<56x128xbf16>
    tpu.vector_store %arg4[%c0_6, %c0_7], %12 {strides = array<i32>} : memref<56x128xbf16, #tpu.memory_space<vmem>>, vector<56x128xbf16>,
    return
  }
  func.func @transform_0(%arg0: i32) -> (i32, i32) {
    %c0_i32 = arith.constant 0 : i32
    %c0_i32_0 = arith.constant 0 : i32
    return %arg0, %c0_i32 : i32, i32
  }
  func.func @transform_1(%arg0: i32) -> (i32, i32) {
    %c0_i32 = arith.constant 0 : i32
    %c0_i32_0 = arith.constant 0 : i32
    %c0_i32_1 = arith.constant 0 : i32
    return %c0_i32, %c0_i32_0 : i32, i32
  }
  func.func @transform_2(%arg0: i32) -> (i32, i32) {
    %c0_i32 = arith.constant 0 : i32
    %c0_i32_0 = arith.constant 0 : i32
    %c0_i32_1 = arith.constant 0 : i32
    return %c0_i32, %c0_i32_0 : i32, i32
  }
  func.func @transform_3(%arg0: i32) -> (i32, i32) {
    %c0_i32 = arith.constant 0 : i32
    %c0_i32_0 = arith.constant 0 : i32
    return %arg0, %c0_i32 : i32, i32
  }
}

module attributes {stable_mosaic.version = 11 : i64} {
  func.func @_matmul_bias_swish_kernel(%arg0: i32, %arg1: memref<24x1152xbf16, #tpu.memory_space<vmem>>, %arg2: memref<1152x128xbf16, #tpu.memory_space<vmem>>, %arg3: memref<1x128xf32, #tpu.memory_space<vmem>>, %arg4: memref<24x128xbf16, #tpu.memory_space<vmem>>) attributes {dimension_semantics = [#tpu.dimension_semantics<parallel>], iteration_bounds = array<i64: 1>, scalar_prefetch = 0 : i64, scratch_operands = 0 : i64, tpu.core_type = #tpu.core_type<tc>, window_params = [{transform_indices = @transform_0, window_bounds = array<i64: 24, 1152>}, {pipeline_mode = #tpu.pipeline_mode<synchronous>, transform_indices = @transform_1, window_bounds = array<i64: 1152, 128>}, {pipeline_mode = #tpu.pipeline_mode<synchronous>, transform_indices = @transform_2, window_bounds = array<i64: 1, 128>}, {transform_indices = @transform_3, window_bounds = array<i64: 24, 128>}]} {
    %c0 = arith.constant 0 : index
    %c0_0 = arith.constant 0 : index
    %0 = vector.load %arg1[%c0, %c0_0] : memref<24x1152xbf16, #tpu.memory_space<vmem>>, vector<24x1152xbf16>
    %c0_1 = arith.constant 0 : index
    %c0_2 = arith.constant 0 : index
    %1 = vector.load %arg2[%c0_1, %c0_2] : memref<1152x128xbf16, #tpu.memory_space<vmem>>, vector<1152x128xbf16>
    %cst = arith.constant dense<0.000000e+00> : vector<24x128xf32>
    %2 = tpu.matmul %0, %1, %cst {dimension_numbers = #tpu.dot_dimension_numbers<[1], [0], [0], [1], [0, 0, 1, 1], [], []>} : vector<24x1152xbf16>, vector<1152x128xbf16>, vector<24x128xf32> -> vector<24x128xf32>
    %c0_3 = arith.constant 0 : index
    %c0_4 = arith.constant 0 : index
    %3 = vector.load %arg3[%c0_3, %c0_4] : memref<1x128xf32, #tpu.memory_space<vmem>>, vector<1x128xf32>
    %4 = vector.broadcast %3 : vector<1x128xf32> to vector<24x128xf32>
    %5 = arith.addf %2, %4 : vector<24x128xf32>
    %6 = arith.negf %5 : vector<24x128xf32>
    %7 = math.exp %6 : vector<24x128xf32>
    %cst_5 = arith.constant 1.000000e+00 : f32
    %8 = vector.broadcast %cst_5 : f32 to vector<24x128xf32>
    %9 = arith.addf %8, %7 : vector<24x128xf32>
    %10 = arith.divf %8, %9 : vector<24x128xf32>
    %11 = arith.mulf %5, %10 : vector<24x128xf32>
    %12 = arith.truncf %11 : vector<24x128xf32> to vector<24x128xbf16>
    %c0_6 = arith.constant 0 : index
    %c0_7 = arith.constant 0 : index
    %13 = vector.load %arg4[%c0_6, %c0_7] : memref<24x128xbf16, #tpu.memory_space<vmem>>, vector<24x128xbf16>
    tpu.vector_store %arg4[%c0_6, %c0_7], %12 {strides = array<i32>} : memref<24x128xbf16, #tpu.memory_space<vmem>>, vector<24x128xbf16>,
    return
  }
  func.func @transform_0(%arg0: i32) -> (i32, i32) {
    %c0_i32 = arith.constant 0 : i32
    %c0_i32_0 = arith.constant 0 : i32
    return %arg0, %c0_i32 : i32, i32
  }
  func.func @transform_1(%arg0: i32) -> (i32, i32) {
    %c0_i32 = arith.constant 0 : i32
    %c0_i32_0 = arith.constant 0 : i32
    %c0_i32_1 = arith.constant 0 : i32
    return %c0_i32, %c0_i32_0 : i32, i32
  }
  func.func @transform_2(%arg0: i32) -> (i32, i32) {
    %c0_i32 = arith.constant 0 : i32
    %c0_i32_0 = arith.constant 0 : i32
    %c0_i32_1 = arith.constant 0 : i32
    return %c0_i32, %c0_i32_0 : i32, i32
  }
  func.func @transform_3(%arg0: i32) -> (i32, i32) {
    %c0_i32 = arith.constant 0 : i32
    %c0_i32_0 = arith.constant 0 : i32
    return %arg0, %c0_i32 : i32, i32
  }
}

module attributes {stable_mosaic.version = 11 : i64} {
  func.func @_matmul_bias_swish_kernel(%arg0: i32, %arg1: memref<8x1152xbf16, #tpu.memory_space<vmem>>, %arg2: memref<1152x128xbf16, #tpu.memory_space<vmem>>, %arg3: memref<1x128xf32, #tpu.memory_space<vmem>>, %arg4: memref<8x128xbf16, #tpu.memory_space<vmem>>) attributes {dimension_semantics = [#tpu.dimension_semantics<parallel>], iteration_bounds = array<i64: 1>, scalar_prefetch = 0 : i64, scratch_operands = 0 : i64, tpu.core_type = #tpu.core_type<tc>, window_params = [{transform_indices = @transform_0, window_bounds = array<i64: 8, 1152>}, {pipeline_mode = #tpu.pipeline_mode<synchronous>, transform_indices = @transform_1, window_bounds = array<i64: 1152, 128>}, {pipeline_mode = #tpu.pipeline_mode<synchronous>, transform_indices = @transform_2, window_bounds = array<i64: 1, 128>}, {transform_indices = @transform_3, window_bounds = array<i64: 8, 128>}]} {
    %c0 = arith.constant 0 : index
    %c0_0 = arith.constant 0 : index
    %0 = vector.load %arg1[%c0, %c0_0] : memref<8x1152xbf16, #tpu.memory_space<vmem>>, vector<8x1152xbf16>
    %c0_1 = arith.constant 0 : index
    %c0_2 = arith.constant 0 : index
    %1 = vector.load %arg2[%c0_1, %c0_2] : memref<1152x128xbf16, #tpu.memory_space<vmem>>, vector<1152x128xbf16>
    %cst = arith.constant dense<0.000000e+00> : vector<8x128xf32>
    %2 = tpu.matmul %0, %1, %cst {dimension_numbers = #tpu.dot_dimension_numbers<[1], [0], [0], [1], [0, 0, 1, 1], [], []>} : vector<8x1152xbf16>, vector<1152x128xbf16>, vector<8x128xf32> -> vector<8x128xf32>
    %c0_3 = arith.constant 0 : index
    %c0_4 = arith.constant 0 : index
    %3 = vector.load %arg3[%c0_3, %c0_4] : memref<1x128xf32, #tpu.memory_space<vmem>>, vector<1x128xf32>
    %4 = vector.broadcast %3 : vector<1x128xf32> to vector<8x128xf32>
    %5 = arith.addf %2, %4 : vector<8x128xf32>
    %6 = arith.negf %5 : vector<8x128xf32>
    %7 = math.exp %6 : vector<8x128xf32>
    %cst_5 = arith.constant 1.000000e+00 : f32
    %8 = vector.broadcast %cst_5 : f32 to vector<8x128xf32>
    %9 = arith.addf %8, %7 : vector<8x128xf32>
    %10 = arith.divf %8, %9 : vector<8x128xf32>
    %11 = arith.mulf %5, %10 : vector<8x128xf32>
    %12 = arith.truncf %11 : vector<8x128xf32> to vector<8x128xbf16>
    %c0_6 = arith.constant 0 : index
    %c0_7 = arith.constant 0 : index
    %13 = vector.load %arg4[%c0_6, %c0_7] : memref<8x128xbf16, #tpu.memory_space<vmem>>, vector<8x128xbf16>
    tpu.vector_store %arg4[%c0_6, %c0_7], %12 {strides = array<i32>} : memref<8x128xbf16, #tpu.memory_space<vmem>>, vector<8x128xbf16>,
    return
  }
  func.func @transform_0(%arg0: i32) -> (i32, i32) {
    %c0_i32 = arith.constant 0 : i32
    %c0_i32_0 = arith.constant 0 : i32
    return %arg0, %c0_i32 : i32, i32
  }
  func.func @transform_1(%arg0: i32) -> (i32, i32) {
    %c0_i32 = arith.constant 0 : i32
    %c0_i32_0 = arith.constant 0 : i32
    %c0_i32_1 = arith.constant 0 : i32
    return %c0_i32, %c0_i32_0 : i32, i32
  }
  func.func @transform_2(%arg0: i32) -> (i32, i32) {
    %c0_i32 = arith.constant 0 : i32
    %c0_i32_0 = arith.constant 0 : i32
    %c0_i32_1 = arith.constant 0 : i32
    return %c0_i32, %c0_i32_0 : i32, i32
  }
  func.func @transform_3(%arg0: i32) -> (i32, i32) {
    %c0_i32 = arith.constant 0 : i32
    %c0_i32_0 = arith.constant 0 : i32
    return %arg0, %c0_i32 : i32, i32
  }
}

module attributes {stable_mosaic.version = 11 : i64} {
  func.func @_tail_kernel(%arg0: memref<8x1152xbf16, #tpu.memory_space<vmem>>, %arg1: memref<1152x128xbf16, #tpu.memory_space<vmem>>, %arg2: memref<1x128xf32, #tpu.memory_space<vmem>>, %arg3: memref<2x8xf32, #tpu.memory_space<vmem>>, %arg4: memref<128x128xf32, #tpu.memory_space<vmem>>, %arg5: memref<1x128xf32, #tpu.memory_space<vmem>>, %arg6: memref<2x1xf32, #tpu.memory_space<vmem>>) attributes {dimension_semantics = [], scalar_prefetch = 0 : i64, scratch_operands = 0 : i64, tpu.core_type = #tpu.core_type<tc>} {
    %c0 = arith.constant 0 : index
    %c0_0 = arith.constant 0 : index
    %0 = vector.load %arg0[%c0, %c0_0] : memref<8x1152xbf16, #tpu.memory_space<vmem>>, vector<8x1152xbf16>
    %c0_1 = arith.constant 0 : index
    %c0_2 = arith.constant 0 : index
    %1 = vector.load %arg1[%c0_1, %c0_2] : memref<1152x128xbf16, #tpu.memory_space<vmem>>, vector<1152x128xbf16>
    %cst = arith.constant dense<0.000000e+00> : vector<8x128xf32>
    %2 = tpu.matmul %0, %1, %cst {dimension_numbers = #tpu.dot_dimension_numbers<[1], [0], [0], [1], [0, 0, 1, 1], [], []>} : vector<8x1152xbf16>, vector<1152x128xbf16>, vector<8x128xf32> -> vector<8x128xf32>
    %c0_3 = arith.constant 0 : index
    %c0_4 = arith.constant 0 : index
    %3 = vector.load %arg2[%c0_3, %c0_4] : memref<1x128xf32, #tpu.memory_space<vmem>>, vector<1x128xf32>
    %4 = vector.broadcast %3 : vector<1x128xf32> to vector<8x128xf32>
    %5 = arith.addf %2, %4 : vector<8x128xf32>
    %6 = arith.negf %5 : vector<8x128xf32>
    %7 = math.exp %6 : vector<8x128xf32>
    %cst_5 = arith.constant 1.000000e+00 : f32
    %8 = vector.broadcast %cst_5 : f32 to vector<8x128xf32>
    %9 = arith.addf %8, %7 : vector<8x128xf32>
    %10 = arith.divf %8, %9 : vector<8x128xf32>
    %11 = arith.mulf %5, %10 : vector<8x128xf32>
    %c0_6 = arith.constant 0 : index
    %c0_7 = arith.constant 0 : index
    %12 = vector.load %arg3[%c0_6, %c0_7] : memref<2x8xf32, #tpu.memory_space<vmem>>, vector<2x8xf32>
    %cst_8 = arith.constant dense<0.000000e+00> : vector<2x128xf32>
    %13 = tpu.matmul %12, %11, %cst_8 {dimension_numbers = #tpu.dot_dimension_numbers<[1], [0], [0], [1], [0, 0, 1, 1], [], []>} : vector<2x8xf32>, vector<8x128xf32>, vector<2x128xf32> -> vector<2x128xf32>
    %c0_9 = arith.constant 0 : index
    %c0_10 = arith.constant 0 : index
    %14 = vector.load %arg4[%c0_9, %c0_10] : memref<128x128xf32, #tpu.memory_space<vmem>>, vector<128x128xf32>
    %cst_11 = arith.constant dense<0.000000e+00> : vector<2x128xf32>
    %15 = tpu.matmul %13, %14, %cst_11 {dimension_numbers = #tpu.dot_dimension_numbers<[1], [0], [0], [1], [0, 0, 1, 1], [], []>} : vector<2x128xf32>, vector<128x128xf32>, vector<2x128xf32> -> vector<2x128xf32>
    %c0_12 = arith.constant 0 : index
    %c0_13 = arith.constant 0 : index
    %16 = vector.load %arg5[%c0_12, %c0_13] : memref<1x128xf32, #tpu.memory_space<vmem>>, vector<1x128xf32>
    %17 = vector.broadcast %16 : vector<1x128xf32> to vector<2x128xf32>
    %18 = arith.addf %15, %17 : vector<2x128xf32>
    %cst_14 = arith.constant dense<0xFF800000> : vector<2xf32>
    %19 = vector.multi_reduction <maximumf>, %18, %cst_14 [1] : vector<2x128xf32> to vector<2xf32>
    %20 = vector.shape_cast %19 : vector<2xf32> to vector<2x1xf32>
    %21 = vector.broadcast %20 : vector<2x1xf32> to vector<2x128xf32>
    %22 = arith.subf %18, %21 : vector<2x128xf32>
    %23 = math.exp %22 : vector<2x128xf32>
    %cst_15 = arith.constant dense<0.000000e+00> : vector<2xf32>
    %24 = vector.multi_reduction <add>, %23, %cst_15 [1] : vector<2x128xf32> to vector<2xf32>
    %25 = vector.shape_cast %24 : vector<2xf32> to vector<2x1xf32>
    %26 = math.log %25 : vector<2x1xf32>
    %27 = arith.addf %20, %26 : vector<2x1xf32>
    %c0_16 = arith.constant 0 : index
    %c0_17 = arith.constant 0 : index
    %28 = vector.load %arg6[%c0_16, %c0_17] : memref<2x1xf32, #tpu.memory_space<vmem>>, vector<2x1xf32>
    tpu.vector_store %arg6[%c0_16, %c0_17], %27 {strides = array<i32>} : memref<2x1xf32, #tpu.memory_space<vmem>>, vector<2x1xf32>,
    return
  }
}

</mosaic_0001>

<bundles_post_ra>
// kernel: shallow_cnn_forward.5
= control target key start
LH: loop header
LB: loop body
LE: loop exit
PB: predicated region body
PF: predicated region fallthrough
CT: control target
= control target key end

     0   :  { %s893_s12 = smov 0   ;;  %s1008_s0 = inlined_call_operand.vmem [shape: bf16[256,32], index: 0, kind: input, shape index: {}]   ;;  %s1009_s1 = inlined_call_operand.vmem [shape: bf16[32,128], index: 1, kind: input, shape index: {}]   ;;  %s1010_s2 = inlined_call_operand.vmem [shape: f32[1,128], index: 2, kind: input, shape index: {}]   ;;  %s1011_s3 = inlined_call_operand.vmem [shape: bf16[256,128], index: 3, kind: output, shape index: {}]  }
   0x1 LB: > { %s624_s13 = sadd.s32 4294967295, %s871_s12   ;;  %p628_p0 = scmp.ge.s32.totalorder %s871_s12, 1  ;;  %s871_s12 = sphi %s893_s12, %s13_s12  }
   0x2   : > { %p138_p1 = scmp.lt.s32.totalorder %s871_s12, 3 }
   0x4   : > { %p139_p2 = pnand %p628_p0, %p138_p1 }
   0x5   : > { %s629_s16 = sshll.u32 (!%p139_p2), %s624_s13, 4 }
   0x6   : > { %142 = sbr.rel (%p139_p2) target bundleno = 267 (0x10b), region = 32  ;;  %p163_p3 = scmp.lt.s32.totalorder (!%p139_p2), %s629_s16, 31 }
   0xb   : > { %v791_v0 = vld [vmem:[%s1009_s1 + $0x8] sm:$0xff]   ;;  %v792_v1 = vld [vmem:[%s1009_s1] sm:$0xff]   ;;  %s1013_s16 = smov (!%p163_p3, %s629_s16), 31  ;;  %vm254_vm0 = vcmask 261120  }
   0xc   : > { %759 = vmatprep.subr.bf16.mxu0 %v791_v0  ;;  %779 = vmatprep.subr.bf16.mxu1 %v791_v0  ;;  %s630_s19 = sshll.u32 %s1013_s16, 2  ;;  %v633_v10 = vld [vmem:[%s1010_s2] ss:$0 sm:$0xff] }
   0xd   : > { %760 = vmatpush3.bf16.msra.mxu0 %v791_v0  ;;  %781 = vmatpush3.bf16.msra.mxu1 %v791_v0  ;;  %s166_s22 = scalar_lea.vmem %s1008_s0, %s630_s19  ;;  %s982_s27 = scalar_lea.vmem %s1011_s3, %s630_s19 }
   0xe   : > { %761 = vmatprep.subr.bf16.mxu0 %v792_v1  ;;  %780 = vmatprep.subr.bf16.mxu1 %v792_v1  ;;  %v793_v2 = vld [vmem:[%s166_s22] sm:$0xff]   ;;  %v795_v4 = vld [vmem:[%s166_s22 + $0x8] sm:$0xff]   ;;  %v797_v6 = vld [vmem:[%s166_s22 + $0x10] sm:$0xff]  }
   0xf   : > { %v794_v3 = vld [vmem:[%s166_s22 + $0x20] sm:$0xff]   ;;  %763 = vmatprep.mubr.msk.bf16.mxu0 %vm254_vm0, %v793_v2  ;;  %v796_v5 = vld [vmem:[%s166_s22 + $0x28] sm:$0xff]   ;;  %v798_v7 = vld [vmem:[%s166_s22 + $0x30] sm:$0xff]  }
  0x10   : > { %771 = vmatprep.mubr.msk.bf16.mxu1 %vm254_vm0, %v794_v3  ;;  %v799_v8 = vld [vmem:[%s166_s22 + $0x18] sm:$0xff]  }
  0x11   : > { %762 = vmatpush3.bf16.msra.mxu0 %v792_v1  ;;  %782 = vmatpush3.bf16.msra.mxu1 %v792_v1  ;;  %v800_v9 = vld [vmem:[%s166_s22 + $0x38] sm:$0xff]  }
  0x14   : > { %764 = vmatmul.mubr.msk.bf16.vlgmr.msra.gmra.mxu0 %vm254_vm0, %v795_v4  ;;  %772 = vmatmul.mubr.msk.bf16.vlgmr.msra.gmra.mxu1 %vm254_vm0, %v796_v5 }
  0x15   : > { %767 = vmatprep.mubr.msk.bf16.mxu0 %vm254_vm0, %v797_v6  ;;  %775 = vmatprep.mubr.msk.bf16.mxu1 %vm254_vm0, %v798_v7 }
  0x1c   : > { %768 = vmatmul.mubr.msk.bf16.gmra.mxu0 %vm254_vm0, %v799_v8  ;;  %776 = vmatmul.mubr.msk.bf16.gmra.mxu1 %vm254_vm0, %v800_v9 }
  0xd4   : > { %v765_v11 = vpop.f32.mrf.mxu0  ;;  %v773_v13 = vpop.f32.mrf.mxu1 }
  0xd5   : > { %v926_v12 = vadd.f32 %v765_v11, %v633_v10  ;;  %v928_v14 = vadd.f32 %v773_v13, %v633_v10 }
  0xd6   : > { %v313_v15 = vpop.f32.mrf.mxu0  ;;  %v345_v18 = vpop.f32.mrf.mxu1 }
  0xd7   : > { %v654_v16 = vmul.f32 -1.442695, %v926_v12  ;;  %v931_v17 = vadd.f32 %v633_v10, %v313_v15  ;;  %v662_v19 = vmul.f32 -1.442695, %v928_v14  ;;  %v934_v20 = vadd.f32 %v633_v10, %v345_v18 }
  0xd8   : > { %v766_v21 = vpop.f32.mrf.mxu0  ;;  %v774_v24 = vpop.f32.mrf.mxu1 }
  0xd9   : > { %801 = vpow2.f32 %v654_v16  ;;  %v652_v22 = vmul.f32 -1.442695, %v931_v17  ;;  %v937_v23 = vadd.f32 %v766_v21, %v633_v10  ;;  %v660_v25 = vmul.f32 -1.442695, %v934_v20 }
  0xda   : > { %803 = vpow2.f32 %v662_v19  ;;  %v940_v26 = vadd.f32 %v774_v24, %v633_v10  ;;  %v316_v27 = vpop.f32.mrf.mxu0  ;;  %v348_v30 = vpop.f32.mrf.mxu1 }
  0xdb   : > { %805 = vpow2.f32 %v652_v22  ;;  %v655_v28 = vmul.f32 -1.442695, %v937_v23  ;;  %v943_v29 = vadd.f32 %v633_v10, %v316_v27  ;;  %v946_v32 = vadd.f32 %v633_v10, %v348_v30 }
  0xdc   : > { %807 = vpow2.f32 %v660_v25  ;;  %v663_v31 = vmul.f32 -1.442695, %v940_v26  ;;  %v769_v33 = vpop.f32.mrf.mxu0  ;;  %v777_v36 = vpop.f32.mrf.mxu1 }
  0xdd   : > { %809 = vpow2.f32 %v655_v28  ;;  %v653_v34 = vmul.f32 -1.442695, %v943_v29  ;;  %v949_v35 = vadd.f32 %v769_v33, %v633_v10  ;;  %v661_v37 = vmul.f32 -1.442695, %v946_v32 }
  0xde   : > { %811 = vpow2.f32 %v663_v31  ;;  %v952_v38 = vadd.f32 %v777_v36, %v633_v10  ;;  %v329_v39 = vpop.f32.mrf.mxu0  ;;  %v361_v42 = vpop.f32.mrf.mxu1 }
  0xdf   : > { %813 = vpow2.f32 %v653_v34  ;;  %v658_v40 = vmul.f32 -1.442695, %v949_v35  ;;  %v955_v41 = vadd.f32 %v633_v10, %v329_v39  ;;  %v958_v44 = vadd.f32 %v633_v10, %v361_v42 }
  0xe0   : > { %815 = vpow2.f32 %v661_v37  ;;  %v666_v43 = vmul.f32 -1.442695, %v952_v38  ;;  %v770_v45 = vpop.f32.mrf.mxu0  ;;  %v778_v48 = vpop.f32.mrf.mxu1 }
  0xe1   : > { %817 = vpow2.f32 %v658_v40  ;;  %v656_v46 = vmul.f32 -1.442695, %v955_v41  ;;  %v961_v47 = vadd.f32 %v770_v45, %v633_v10  ;;  %v664_v49 = vmul.f32 -1.442695, %v958_v44 }
  0xe2   : > { %819 = vpow2.f32 %v666_v43  ;;  %v964_v50 = vadd.f32 %v778_v48, %v633_v10  ;;  %v332_v51 = vpop.f32.mrf.mxu0  ;;  %v364_v54 = vpop.f32.mrf.mxu1 }
  0xe3   : > { %821 = vpow2.f32 %v656_v46  ;;  %v659_v52 = vmul.f32 -1.442695, %v961_v47  ;;  %v967_v53 = vadd.f32 %v633_v10, %v332_v51  ;;  %v970_v56 = vadd.f32 %v633_v10, %v364_v54 }
  0xe4   : > { %823 = vpow2.f32 %v664_v49  ;;  %v667_v55 = vmul.f32 -1.442695, %v964_v50 }
  0xe5   : > { %825 = vpow2.f32 %v659_v52  ;;  %v657_v57 = vmul.f32 -1.442695, %v967_v53  ;;  %v665_v59 = vmul.f32 -1.442695, %v970_v56 }
  0xe6   : > { %v802_v58 = vpop.eup %801  ;;  %827 = vpow2.f32 %v667_v55 }
  0xe7   : > { %v804_v60 = vpop.eup %803  ;;  %v426_v61 = vadd.f32 1.0, %v802_v58  ;;  %829 = vpow2.f32 %v657_v57 }
  0xe8   : > { %v806_v62 = vpop.eup %805  ;;  %v434_v63 = vadd.f32 1.0, %v804_v60  ;;  %831 = vpow2.f32 %v665_v59 }
  0xe9   : > { %v808_v0 = vpop.eup %807  ;;  %833 = vrcp.f32 %v426_v61  ;;  %v424_v1 = vadd.f32 1.0, %v806_v62 }
  0xea   : > { %v810_v2 = vpop.eup %809  ;;  %835 = vrcp.f32 %v434_v63  ;;  %v432_v3 = vadd.f32 1.0, %v808_v0 }
  0xeb   : > { %v812_v4 = vpop.eup %811  ;;  %837 = vrcp.f32 %v424_v1  ;;  %v427_v5 = vadd.f32 1.0, %v810_v2 }
  0xec   : > { %v814_v6 = vpop.eup %813  ;;  %839 = vrcp.f32 %v432_v3  ;;  %v435_v7 = vadd.f32 1.0, %v812_v4 }
  0xed   : > { %v816_v8 = vpop.eup %815  ;;  %841 = vrcp.f32 %v427_v5  ;;  %v425_v9 = vadd.f32 1.0, %v814_v6 }
  0xee   : > { %v818_v10 = vpop.eup %817  ;;  %843 = vrcp.f32 %v435_v7  ;;  %v433_v11 = vadd.f32 1.0, %v816_v8 }
  0xef   : > { %v820_v13 = vpop.eup %819  ;;  %845 = vrcp.f32 %v425_v9  ;;  %v430_v15 = vadd.f32 1.0, %v818_v10 }
  0xf0   : > { %v822_v16 = vpop.eup %821  ;;  %847 = vrcp.f32 %v433_v11  ;;  %v438_v18 = vadd.f32 1.0, %v820_v13 }
  0xf1   : > { %v824_v19 = vpop.eup %823  ;;  %849 = vrcp.f32 %v430_v15  ;;  %v428_v21 = vadd.f32 1.0, %v822_v16 }
  0xf2   : > { %v826_v22 = vpop.eup %825  ;;  %851 = vrcp.f32 %v438_v18  ;;  %v436_v24 = vadd.f32 1.0, %v824_v19 }
  0xf3   : > { %v828_v25 = vpop.eup %827  ;;  %853 = vrcp.f32 %v428_v21  ;;  %v431_v27 = vadd.f32 1.0, %v826_v22 }
  0xf4   : > { %v830_v28 = vpop.eup %829  ;;  %855 = vrcp.f32 %v436_v24  ;;  %v439_v30 = vadd.f32 1.0, %v828_v25 }
  0xf5   : > { %v832_v31 = vpop.eup %831  ;;  %857 = vrcp.f32 %v431_v27  ;;  %v429_v33 = vadd.f32 1.0, %v830_v28 }
  0xf6   : > { %v834_v34 = vpop.eup %833  ;;  %859 = vrcp.f32 %v439_v30  ;;  %v437_v36 = vadd.f32 1.0, %v832_v31 }
  0xf7   : > { %v836_v37 = vpop.eup %835  ;;  %861 = vrcp.f32 %v429_v33  ;;  %v474_v45 = vmul.f32 %v834_v34, %v926_v12 }
  0xf8   : > { %v838_v39 = vpop.eup %837  ;;  %863 = vrcp.f32 %v437_v36  ;;  %v482_v49 = vmul.f32 %v836_v37, %v928_v14 }
  0xf9   : > { %v840_v40 = vpop.eup %839  ;;  %v472_v54 = vmul.f32 %v838_v39, %v931_v17 }
  0xfa   : > { %v842_v42 = vpop.eup %841  ;;  %v480_v14 = vmul.f32 %v840_v40, %v934_v20 }
  0xfb   : > { %v844_v43 = vpop.eup %843  ;;  %v475_v46 = vmul.f32 %v842_v42, %v937_v23 }
  0xfc   : > { %v846_v48 = vpop.eup %845  ;;  %v483_v51 = vmul.f32 %v844_v43, %v940_v26 }
  0xfd   : > { %v848_v52 = vpop.eup %847  ;;  %v710_v12 = vpack.c.bf16 %v475_v46, %v474_v45  ;;  %v473_v23 = vmul.f32 %v846_v48, %v943_v29 }
  0xfe   : > { %v850_v55 = vpop.eup %849  ;;  %v730_v57 = vpack.c.bf16 %v483_v51, %v482_v49  ;;  %v481_v58 = vmul.f32 %v848_v52, %v946_v32 }
  0xff   : > { %v852_v59 = vpop.eup %851  ;;  %742 = vst [vmem:[%s982_s27 + $0x8] sm:$0xff] %v710_v12   ;;  %v705_v60 = vpack.c.bf16 %v473_v23, %v472_v54  ;;  %v478_v29 = vmul.f32 %v850_v55, %v949_v35 }
 0x100   : > { %v854_v61 = vpop.eup %853  ;;  %746 = vst [vmem:[%s982_s27 + $0x28] sm:$0xff] %v730_v57   ;;  %v725_v26 = vpack.c.bf16 %v481_v58, %v480_v14  ;;  %v486_v0 = vmul.f32 %v852_v59, %v952_v38 }
 0x101   : > { %v856_v62 = vpop.eup %855  ;;  %706 = vst [vmem:[%s982_s27] sm:$0xff] %v705_v60   ;;  %v476_v3 = vmul.f32 %v854_v61, %v955_v41 }
 0x102   : > { %v858_v17 = vpop.eup %857  ;;  %745 = vst [vmem:[%s982_s27 + $0x20] sm:$0xff] %v725_v26   ;;  %v484_v6 = vmul.f32 %v856_v62, %v958_v44 }
 0x103   : > { %v860_v63 = vpop.eup %859  ;;  %v479_v20 = vmul.f32 %v858_v17, %v961_v47 }
 0x104   : > { %v862_v32 = vpop.eup %861  ;;  %v487_v1 = vmul.f32 %v860_v63, %v964_v50 }
 0x105   : > { %v864_v2 = vpop.eup %863  ;;  %v720_v4 = vpack.c.bf16 %v479_v20, %v478_v29  ;;  %v477_v5 = vmul.f32 %v862_v32, %v967_v53 }
 0x106   : > { %v740_v7 = vpack.c.bf16 %v487_v1, %v486_v0  ;;  %v485_v35 = vmul.f32 %v864_v2, %v970_v56 }
 0x107   : > { %744 = vst [vmem:[%s982_s27 + $0x18] sm:$0xff] %v720_v4   ;;  %v715_v8 = vpack.c.bf16 %v477_v5, %v476_v3 }
 0x108   : > { %748 = vst [vmem:[%s982_s27 + $0x38] sm:$0xff] %v740_v7   ;;  %v735_v47 = vpack.c.bf16 %v485_v35, %v484_v6 }
 0x109   : > { %743 = vst [vmem:[%s982_s27 + $0x10] sm:$0xff] %v715_v8  }
 0x10a   : > { %747 = vst [vmem:[%s982_s27 + $0x30] sm:$0xff] %v735_v47  }
 0x10b PF: > { %s13_s12 = sadd.s32 1, %s871_s12  }
 0x10c   : > { %p10_p4 = scmp.ge.s32.totalorder %s13_s12, 4  }
 0x10e   :  { %12 = sbr.rel (!%p10_p4) target bundleno = 1 (0x1), region = 62 }

// kernel: shallow_cnn_forward.6
= control target key start
LH: loop header
LB: loop body
LE: loop exit
PB: predicated region body
PF: predicated region fallthrough
CT: control target
= control target key end

     0   :  { %s2118_s1 = inlined_call_operand.vmem [shape: bf16[1152,128], index: 1, kind: input, shape index: {}]   ;;  %s2119_s0 = inlined_call_operand.vmem [shape: bf16[56,1152], index: 0, kind: input, shape index: {}]   ;;  %s2120_s2 = inlined_call_operand.vmem [shape: f32[1,128], index: 2, kind: input, shape index: {}]   ;;  %s2121_s3 = inlined_call_operand.vmem [shape: bf16[56,128], index: 3, kind: output, shape index: {}]  }
   0x1   :  { %v1571_v0 = vld [vmem:[%s2118_s1 + $0x78] sm:$0xff]   ;;  %v1575_v4 = vld [vmem:[%s2118_s1 + $0x70] sm:$0xff]   ;;  %v1579_v8 = vld [vmem:[%s2118_s1 + $0x68] sm:$0xff]  }
   0x2   :  { %v1572_v1 = vld [vmem:[%s2118_s1 + $0xf8] sm:$0xff]   ;;  %1359 = vmatprep.subr.bf16.mxu0 %v1571_v0  ;;  %v1576_v5 = vld [vmem:[%s2118_s1 + $0xf0] sm:$0xff]   ;;  %v1580_v9 = vld [vmem:[%s2118_s1 + $0xe8] sm:$0xff]  }
   0x3   :  { %v1573_v2 = vld [vmem:[%s2118_s1 + $0x38] sm:$0xff]   ;;  %1399 = vmatprep.subr.bf16.mxu1 %v1572_v1  ;;  %v1577_v6 = vld [vmem:[%s2118_s1 + $0x30] sm:$0xff]   ;;  %v1581_v10 = vld [vmem:[%s2118_s1 + $0x28] sm:$0xff]  }
   0x4   :  { %v1574_v3 = vld [vmem:[%s2118_s1 + $0xb8] sm:$0xff]   ;;  %1360 = vmatpush3.bf16.msra.mxu0 %v1573_v2  ;;  %v1578_v7 = vld [vmem:[%s2118_s1 + $0xb0] sm:$0xff]   ;;  %v1582_v11 = vld [vmem:[%s2118_s1 + $0xa8] sm:$0xff]  }
   0x5   :  { %1400 = vmatpush3.bf16.msra.mxu1 %v1574_v3  ;;  %1361 = vmatprep.subr.bf16.mxu0 %v1575_v4  ;;  %v1583_v12 = vld [vmem:[%s2118_s1 + $0x60] sm:$0xff]   ;;  %v1587_v16 = vld [vmem:[%s2118_s1 + $0x58] sm:$0xff]   ;;  %v1591_v20 = vld [vmem:[%s2118_s1 + $0x50] sm:$0xff]  }
   0x6   :  { %1401 = vmatprep.subr.bf16.mxu1 %v1576_v5  ;;  %v1584_v13 = vld [vmem:[%s2118_s1 + $0xe0] sm:$0xff]   ;;  %v1588_v17 = vld [vmem:[%s2118_s1 + $0xd8] sm:$0xff]   ;;  %v1592_v21 = vld [vmem:[%s2118_s1 + $0xd0] sm:$0xff]  }
   0x7   :  { %v1585_v14 = vld [vmem:[%s2118_s1 + $0x20] sm:$0xff]   ;;  %v1589_v18 = vld [vmem:[%s2118_s1 + $0x18] sm:$0xff]   ;;  %v1593_v22 = vld [vmem:[%s2118_s1 + $0x10] sm:$0xff]  }
   0x8   :  { %1362 = vmatpush3.bf16.msra.mxu0 %v1577_v6  ;;  %v1586_v15 = vld [vmem:[%s2118_s1 + $0xa0] sm:$0xff]   ;;  %v1590_v19 = vld [vmem:[%s2118_s1 + $0x98] sm:$0xff]   ;;  %v1594_v23 = vld [vmem:[%s2118_s1 + $0x90] sm:$0xff]  }
   0x9   :  { %1402 = vmatpush3.bf16.msra.mxu1 %v1578_v7  ;;  %1363 = vmatprep.subr.bf16.mxu0 %v1579_v8  ;;  %v1595_v24 = vld [vmem:[%s2118_s1 + $0x48] sm:$0xff]   ;;  %v1599_v28 = vld [vmem:[%s2118_s1 + $0x40] sm:$0xff]   ;;  %v1609_v36 = vld [vmem:[%s2118_s1 + $0x178] sm:$0xff]  }
   0xa   :  { %1403 = vmatprep.subr.bf16.mxu1 %v1580_v9  ;;  %v1596_v25 = vld [vmem:[%s2118_s1 + $0xc8] sm:$0xff]   ;;  %v1600_v29 = vld [vmem:[%s2118_s1 + $0xc0] sm:$0xff]   ;;  %v1610_v37 = vld [vmem:[%s2118_s1 + $0x1f8] sm:$0xff]  }
   0xb   :  { %v1597_v26 = vld [vmem:[%s2118_s1 + $0x8] sm:$0xff]   ;;  %v1601_v30 = vld [vmem:[%s2118_s1] sm:$0xff]   ;;  %v1611_v38 = vld [vmem:[%s2118_s1 + $0x138] sm:$0xff]  }
   0xc   :  { %1364 = vmatpush3.bf16.msra.mxu0 %v1581_v10  ;;  %v1598_v27 = vld [vmem:[%s2118_s1 + $0x88] sm:$0xff]   ;;  %v1602_v31 = vld [vmem:[%s2118_s1 + $0x80] sm:$0xff]   ;;  %v1612_v39 = vld [vmem:[%s2118_s1 + $0x1b8] sm:$0xff]  }
   0xd   :  { %1404 = vmatpush3.bf16.msra.mxu1 %v1582_v11  ;;  %1365 = vmatprep.subr.bf16.mxu0 %v1583_v12  ;;  %v1603_v32 = vld [vmem:[%s2119_s0] ss:$36 sps:$4 sm:$0xff]   ;;  %v1606_v34 = vld [vmem:[%s2119_s0 + $0x8] ss:$36 sps:$4 sm:$0xff]   ;;  %v1613_v40 = vld [vmem:[%s2118_s1 + $0x170] sm:$0xff]  }
   0xe   :  { %1405 = vmatprep.subr.bf16.mxu1 %v1584_v13  ;;  %v1605_v33 = vld [vmem:[%s2119_s0 + $0x4] ss:$36 sps:$4 sm:$0xff]   ;;  %v1608_v35 = vld [vmem:[%s2119_s0 + $0xc] ss:$36 sps:$4 sm:$0xff]   ;;  %v1619_v45 = vld [vmem:[%s2119_s0 + $0x54] ss:$36 sps:$4 sm:$0xff]  }
   0xf   :  { %835 = vmatprep.mubr.bf16.mxu0 %v1605_v33  ;;  %899 = vmatprep.mubr.bf16.mxu1 %v1608_v35  ;;  %v1614_v41 = vld [vmem:[%s2118_s1 + $0x1f0] sm:$0xff]   ;;  %v1621_v46 = vld [vmem:[%s2119_s0 + $0x48] ss:$36 sps:$4 sm:$0xff]   ;;  %v1627_v52 = vld [vmem:[%s2118_s1 + $0x160] sm:$0xff]  }
  0x10   :  { %1366 = vmatpush3.bf16.msra.mxu0 %v1585_v14  ;;  %v1615_v42 = vld [vmem:[%s2118_s1 + $0x130] sm:$0xff]   ;;  %v1623_v48 = vld [vmem:[%s2118_s1 + $0x168] sm:$0xff]   ;;  %v1628_v53 = vld [vmem:[%s2118_s1 + $0x1e0] sm:$0xff]  }
  0x11   :  { %1406 = vmatpush3.bf16.msra.mxu1 %v1586_v15  ;;  %1367 = vmatprep.subr.bf16.mxu0 %v1587_v16  ;;  %v1616_v43 = vld [vmem:[%s2118_s1 + $0x1b0] sm:$0xff]   ;;  %v1624_v49 = vld [vmem:[%s2118_s1 + $0x1e8] sm:$0xff]   ;;  %v1629_v54 = vld [vmem:[%s2118_s1 + $0x120] sm:$0xff]  }
  0x12   :  { %1407 = vmatprep.subr.bf16.mxu1 %v1588_v17  ;;  %v1617_v44 = vld [vmem:[%s2119_s0 + $0x4c] ss:$36 sps:$4 sm:$0xff]   ;;  %v1630_v55 = vld [vmem:[%s2118_s1 + $0x1a0] sm:$0xff]   ;;  %v1631_v56 = vld [vmem:[%s2119_s0 + $0x94] ss:$36 sps:$4 sm:$0xff]  }
  0x13   :  { %v1622_v47 = vld [vmem:[%s2119_s0 + $0x50] ss:$36 sps:$4 sm:$0xff]   ;;  %v1625_v50 = vld [vmem:[%s2118_s1 + $0x128] sm:$0xff]   ;;  %v1633_v57 = vld [vmem:[%s2119_s0 + $0x9c] ss:$36 sps:$4 sm:$0xff]  }
  0x14   :  { %1368 = vmatpush3.bf16.msra.mxu0 %v1589_v18  ;;  %v1626_v51 = vld [vmem:[%s2118_s1 + $0x1a8] sm:$0xff]   ;;  %v1635_v58 = vld [vmem:[%s2119_s0 + $0x90] ss:$36 sps:$4 sm:$0xff]   ;;  %v1636_v59 = vld [vmem:[%s2119_s0 + $0x98] ss:$36 sps:$4 sm:$0xff]  }
  0x15   :  { %1408 = vmatpush3.bf16.msra.mxu1 %v1590_v19  ;;  %1369 = vmatprep.subr.bf16.mxu0 %v1591_v20  ;;  %v1637_v60 = vld [vmem:[%s2118_s1 + $0x158] sm:$0xff]   ;;  %v1641_v0 = vld [vmem:[%s2118_s1 + $0x150] sm:$0xff]   ;;  %v46_v5 = vld [vmem:[%s2119_s0 + $0xe0] sm:$0xff] }
  0x16   :  { %1409 = vmatprep.subr.bf16.mxu1 %v1592_v21  ;;  %v1638_v61 = vld [vmem:[%s2118_s1 + $0x1d8] sm:$0xff]   ;;  %v1642_v1 = vld [vmem:[%s2118_s1 + $0x1d0] sm:$0xff]   ;;  %v1243_v7 = vcombine.high %v46_v5, %v46_v5  ;;  %v1242_v9 = vcombine.low %v46_v5, %v46_v5  ;;  %v1649_v10 = vld [vmem:[%s2118_s1 + $0x148] sm:$0xff]  }
  0x17   :  { %v1639_v62 = vld [vmem:[%s2118_s1 + $0x118] sm:$0xff]   ;;  %v1643_v2 = vld [vmem:[%s2118_s1 + $0x110] sm:$0xff]   ;;  %v1650_v11 = vld [vmem:[%s2118_s1 + $0x1c8] sm:$0xff]  }
  0x18   :  { %1370 = vmatpush3.bf16.msra.mxu0 %v1593_v22  ;;  %v1640_v63 = vld [vmem:[%s2118_s1 + $0x198] sm:$0xff]   ;;  %v1644_v3 = vld [vmem:[%s2118_s1 + $0x190] sm:$0xff]   ;;  %v1651_v12 = vld [vmem:[%s2118_s1 + $0x108] sm:$0xff]  }
  0x19   :  { %1410 = vmatpush3.bf16.msra.mxu1 %v1594_v23  ;;  %1371 = vmatprep.subr.bf16.mxu0 %v1595_v24  ;;  %v45_v4 = vld [vmem:[%s2119_s0 + $0xd8] sm:$0xff]  ;;  %v1652_v13 = vld [vmem:[%s2118_s1 + $0x188] sm:$0xff]   ;;  %v1653_v14 = vld [vmem:[%s2118_s1 + $0x140] sm:$0xff]  }
  0x1a   :  { %1411 = vmatprep.subr.bf16.mxu1 %v1596_v25  ;;  %v1241_v6 = vcombine.high %v45_v4, %v45_v4  ;;  %v1240_v8 = vcombine.low %v45_v4, %v45_v4  ;;  %v1654_v15 = vld [vmem:[%s2118_s1 + $0x1c0] sm:$0xff]   ;;  %v1657_v18 = vld [vmem:[%s2119_s0 + $0x10] ss:$36 sps:$4 sm:$0xff]   ;;  %v1660_v20 = vld [vmem:[%s2119_s0 + $0x18] ss:$36 sps:$4 sm:$0xff]  }
  0x1b   :  { %v1655_v16 = vld [vmem:[%s2118_s1 + $0x100] sm:$0xff]   ;;  %v1659_v19 = vld [vmem:[%s2119_s0 + $0x14] ss:$36 sps:$4 sm:$0xff]   ;;  %v47_v33 = vld [vmem:[%s2119_s0 + $0xe8] sm:$0xff] }
  0x1c   :  { %1372 = vmatpush3.bf16.msra.mxu0 %v1597_v26  ;;  %v1656_v17 = vld [vmem:[%s2118_s1 + $0x180] sm:$0xff]   ;;  %v1663_v22 = vld [vmem:[%s2118_s1 + $0x238] sm:$0xff]   ;;  %v1664_v23 = vld [vmem:[%s2118_s1 + $0x230] sm:$0xff]  }
  0x1d   :  { %1412 = vmatpush3.bf16.msra.mxu1 %v1598_v27  ;;  %1373 = vmatprep.subr.bf16.mxu0 %v1599_v28  ;;  %v1662_v21 = vld [vmem:[%s2119_s0 + $0x1c] ss:$36 sps:$4 sm:$0xff]   ;;  %v1667_v25 = vld [vmem:[%s2119_s0 + $0x64] ss:$36 sps:$4 sm:$0xff]  }
  0x1e   :  { %1413 = vmatprep.subr.bf16.mxu1 %v1600_v29  ;;  %v1665_v24 = vld [vmem:[%s2119_s0 + $0x5c] ss:$36 sps:$4 sm:$0xff]   ;;  %v1671_v27 = vld [vmem:[%s2118_s1 + $0x228] sm:$0xff]  }
  0x1f   :  { %v1669_v26 = vld [vmem:[%s2119_s0 + $0x58] ss:$36 sps:$4 sm:$0xff]   ;;  %v1670_v28 = vld [vmem:[%s2119_s0 + $0x60] ss:$36 sps:$4 sm:$0xff]  }
  0x20   :  { %1374 = vmatpush3.bf16.msra.mxu0 %v1601_v30  ;;  %v1673_v29 = vld [vmem:[%s2119_s0 + $0xa4] ss:$36 sps:$4 sm:$0xff]   ;;  %v1675_v30 = vld [vmem:[%s2119_s0 + $0xac] ss:$36 sps:$4 sm:$0xff]  }
  0x21   :  { %1414 = vmatpush3.bf16.msra.mxu1 %v1602_v31  ;;  %1439 = vmatprep.subr.bf16.mxu0 %v1609_v36  ;;  %v1672_v31 = vld [vmem:[%s2118_s1 + $0x220] sm:$0xff]   ;;  %v1678_v36 = vld [vmem:[%s2119_s0 + $0xa8] ss:$36 sps:$4 sm:$0xff]  }
  0x22   :  { %1479 = vmatprep.subr.bf16.mxu1 %v1610_v37  ;;  %v1677_v35 = vld [vmem:[%s2119_s0 + $0xa0] ss:$36 sps:$4 sm:$0xff]   ;;  %v1245_v37 = vcombine.high %v47_v33, %v47_v33 }
  0x23   :  { %836 = vmatmul.mubr.bf16.vlgmr.msra.gmra.mxu0 %v1603_v32  ;;  %v1679_v32 = vld [vmem:[%s2118_s1 + $0x218] sm:$0xff]  }
  0x24   :  { %900 = vmatmul.mubr.bf16.vlgmr.msra.gmra.mxu1 %v1606_v34  ;;  %1440 = vmatpush3.bf16.msra.mxu0 %v1611_v38  ;;  %v48_v34 = vld [vmem:[%s2119_s0 + $0xf0] sm:$0xff] }
  0x25   :  { %1480 = vmatpush3.bf16.msra.mxu1 %v1612_v39  ;;  %1441 = vmatprep.subr.bf16.mxu0 %v1613_v40  ;;  %v1247_v38 = vcombine.high %v48_v34, %v48_v34  ;;  %v1680_v39 = vld [vmem:[%s2118_s1 + $0x210] sm:$0xff]   ;;  %v1685_v40 = vld [vmem:[%s2118_s1 + $0x208] sm:$0xff]  }
  0x26   :  { %1481 = vmatprep.subr.bf16.mxu1 %v1614_v41  ;;  %843 = vmatprep.mubr.bf16.mxu0 %v1617_v44  ;;  %v1244_v41 = vcombine.low %v47_v33, %v47_v33  ;;  %v1688_v44 = vld [vmem:[%s2119_s0 + $0xb0] ss:$36 sps:$4 sm:$0xff]  }
  0x27   :  { %907 = vmatprep.mubr.bf16.mxu1 %v1619_v45  ;;  %v1686_v45 = vld [vmem:[%s2118_s1 + $0x200] sm:$0xff]  }
  0x28   :  { %1442 = vmatpush3.bf16.msra.mxu0 %v1615_v42  ;;  %v1246_v42 = vcombine.low %v48_v34, %v48_v34 }
  0x29   :  { %1482 = vmatpush3.bf16.msra.mxu1 %v1616_v43  ;;  %1443 = vmatprep.subr.bf16.mxu0 %v1623_v48  ;;  %v1687_v43 = vld [vmem:[%s2119_s0 + $0x20] ss:$36 sps:$4 sm:$0xff]  }
  0x2a   :  { %1483 = vmatprep.subr.bf16.mxu1 %v1624_v49 }
  0x2b   :  { %844 = vmatmul.mubr.bf16.gmra.mxu0 %v1621_v46  ;;  %v1689_v46 = vld [vmem:[%s2119_s0 + $0x68] ss:$36 sps:$4 sm:$0xff]  }
  0x2c   :  { %908 = vmatmul.mubr.bf16.gmra.mxu1 %v1622_v47  ;;  %1444 = vmatpush3.bf16.msra.mxu0 %v1625_v50  ;;  %v1690_v47 = vld [vmem:[%s2119_s0 + $0xf8] ss:$0 sps:$4 sm:$0xff]  }
  0x2d   :  { %1484 = vmatpush3.bf16.msra.mxu1 %v1626_v51  ;;  %1445 = vmatprep.subr.bf16.mxu0 %v1627_v52 }
  0x2e   :  { %1485 = vmatprep.subr.bf16.mxu1 %v1628_v53  ;;  %851 = vmatprep.mubr.bf16.mxu0 %v1631_v56 }
  0x2f   :  { %915 = vmatprep.mubr.bf16.mxu1 %v1633_v57 }
  0x30   :  { %1446 = vmatpush3.bf16.msra.mxu0 %v1629_v54 }
  0x31   :  { %1486 = vmatpush3.bf16.msra.mxu1 %v1630_v55  ;;  %1447 = vmatprep.subr.bf16.mxu0 %v1637_v60 }
  0x32   :  { %1487 = vmatprep.subr.bf16.mxu1 %v1638_v61 }
  0x33   :  { %852 = vmatmul.mubr.bf16.gmra.mxu0 %v1635_v58 }
  0x34   :  { %916 = vmatmul.mubr.bf16.gmra.mxu1 %v1636_v59  ;;  %1448 = vmatpush3.bf16.msra.mxu0 %v1639_v62 }
  0x35   :  { %1488 = vmatpush3.bf16.msra.mxu1 %v1640_v63  ;;  %1449 = vmatprep.subr.bf16.mxu0 %v1641_v0 }
  0x36   :  { %1489 = vmatprep.subr.bf16.mxu1 %v1642_v1  ;;  %859 = vmatprep.mubr.bf16.mxu0 %v1241_v6 }
  0x37   :  { %923 = vmatprep.mubr.bf16.mxu1 %v1243_v7 }
  0x38   :  { %1450 = vmatpush3.bf16.msra.mxu0 %v1643_v2 }
  0x39   :  { %1490 = vmatpush3.bf16.msra.mxu1 %v1644_v3  ;;  %1451 = vmatprep.subr.bf16.mxu0 %v1649_v10 }
  0x3a   :  { %1491 = vmatprep.subr.bf16.mxu1 %v1650_v11 }
  0x3b   :  { %860 = vmatmul.mubr.bf16.gmra.mxu0 %v1240_v8 }
  0x3c   :  { %924 = vmatmul.mubr.bf16.gmra.mxu1 %v1242_v9  ;;  %1452 = vmatpush3.bf16.msra.mxu0 %v1651_v12 }
  0x3d   :  { %1492 = vmatpush3.bf16.msra.mxu1 %v1652_v13  ;;  %1453 = vmatprep.subr.bf16.mxu0 %v1653_v14 }
  0x3e   :  { %1493 = vmatprep.subr.bf16.mxu1 %v1654_v15  ;;  %963 = vmatprep.mubr.bf16.mxu0 %v1659_v19 }
  0x3f   :  { %1027 = vmatprep.mubr.bf16.mxu1 %v1662_v21 }
  0x40   :  { %1454 = vmatpush3.bf16.msra.mxu0 %v1655_v16 }
  0x41   :  { %1494 = vmatpush3.bf16.msra.mxu1 %v1656_v17  ;;  %1531 = vmatprep.subr.bf16.mxu0 %v1663_v22 }
  0x42   :  { %1555 = vmatprep.subr.bf16.mxu1 %v1663_v22 }
  0x43   :  { %964 = vmatmul.mubr.bf16.vlgmr.msra.gmra.mxu0 %v1657_v18 }
  0x44   :  { %1028 = vmatmul.mubr.bf16.vlgmr.msra.gmra.mxu1 %v1660_v20  ;;  %1532 = vmatpush3.bf16.msra.mxu0 %v1663_v22 }
  0x45   :  { %1563 = vmatpush3.bf16.msra.mxu1 %v1663_v22  ;;  %1533 = vmatprep.subr.bf16.mxu0 %v1664_v23 }
  0x46   :  { %1556 = vmatprep.subr.bf16.mxu1 %v1664_v23  ;;  %971 = vmatprep.mubr.bf16.mxu0 %v1665_v24 }
  0x47   :  { %1035 = vmatprep.mubr.bf16.mxu1 %v1667_v25 }
  0x48   :  { %1534 = vmatpush3.bf16.msra.mxu0 %v1664_v23 }
  0x49   :  { %1564 = vmatpush3.bf16.msra.mxu1 %v1664_v23  ;;  %1535 = vmatprep.subr.bf16.mxu0 %v1671_v27 }
  0x4a   :  { %1557 = vmatprep.subr.bf16.mxu1 %v1671_v27 }
  0x4b   :  { %972 = vmatmul.mubr.bf16.gmra.mxu0 %v1669_v26 }
  0x4c   :  { %1036 = vmatmul.mubr.bf16.gmra.mxu1 %v1670_v28  ;;  %979 = vmatprep.mubr.bf16.mxu0 %v1673_v29 }
  0x4d   :  { %1536 = vmatpush3.bf16.msra.mxu0 %v1671_v27  ;;  %1043 = vmatprep.mubr.bf16.mxu1 %v1675_v30 }
  0x4e   :  { %1565 = vmatpush3.bf16.msra.mxu1 %v1671_v27  ;;  %1537 = vmatprep.subr.bf16.mxu0 %v1672_v31 }
  0x4f   :  { %1558 = vmatprep.subr.bf16.mxu1 %v1672_v31 }
  0x51   :  { %1538 = vmatpush3.bf16.msra.mxu0 %v1672_v31 }
  0x52   :  { %1566 = vmatpush3.bf16.msra.mxu1 %v1672_v31  ;;  %1539 = vmatprep.subr.bf16.mxu0 %v1679_v32 }
  0x53   :  { %980 = vmatmul.mubr.bf16.gmra.mxu0 %v1677_v35  ;;  %1559 = vmatprep.subr.bf16.mxu1 %v1679_v32  ;;  %v1212_v35 = vld [vmem:[%s2120_s2] ss:$0 sm:$0xff] }
  0x54   :  { %1044 = vmatmul.mubr.bf16.gmra.mxu1 %v1678_v36  ;;  %987 = vmatprep.mubr.bf16.mxu0 %v1245_v37 }
  0x55   :  { %1540 = vmatpush3.bf16.msra.mxu0 %v1679_v32  ;;  %1051 = vmatprep.mubr.bf16.mxu1 %v1247_v38 }
  0x56   :  { %1567 = vmatpush3.bf16.msra.mxu1 %v1679_v32  ;;  %1541 = vmatprep.subr.bf16.mxu0 %v1680_v39 }
  0x57   :  { %1560 = vmatprep.subr.bf16.mxu1 %v1680_v39 }
  0x59   :  { %1542 = vmatpush3.bf16.msra.mxu0 %v1680_v39 }
  0x5a   :  { %1568 = vmatpush3.bf16.msra.mxu1 %v1680_v39  ;;  %1543 = vmatprep.subr.bf16.mxu0 %v1685_v40 }
  0x5b   :  { %988 = vmatmul.mubr.bf16.gmra.mxu0 %v1244_v41  ;;  %1561 = vmatprep.subr.bf16.mxu1 %v1685_v40 }
  0x5c   :  { %1052 = vmatmul.mubr.bf16.gmra.mxu1 %v1246_v42  ;;  %1547 = vmatprep.mubr.bf16.mxu0 %v1687_v43 }
  0x5d   :  { %1544 = vmatpush3.bf16.msra.mxu0 %v1685_v40  ;;  %1551 = vmatprep.mubr.bf16.mxu1 %v1688_v44 }
  0x5e   :  { %1569 = vmatpush3.bf16.msra.mxu1 %v1685_v40  ;;  %1545 = vmatprep.subr.bf16.mxu0 %v1686_v45 }
  0x5f   :  { %1562 = vmatprep.subr.bf16.mxu1 %v1686_v45 }
  0x61   :  { %1546 = vmatpush3.bf16.msra.mxu0 %v1686_v45 }
  0x62   :  { %1570 = vmatpush3.bf16.msra.mxu1 %v1686_v45 }
  0x64   :  { %1548 = vmatmul.mubr.bf16.vlgmr.msra.gmra.mxu0 %v1689_v46 }
  0x65   :  { %1552 = vmatmul.mubr.bf16.vlgmr.msra.gmra.mxu1 %v1690_v47 }
  0xe3   :  { %v1375_v48 = vpop.f32.mrf.mxu0 }
  0xe4   :  { %v2051_v49 = vpop.f32.mrf.mxu1 }
  0xe5   :  { %v1376_v50 = vpop.f32.mrf.mxu0 }
  0xe6   :  { %v1416_v51 = vpop.f32.mrf.mxu1  ;;  %v1377_v33 = vadd.f32 %v1376_v50, %v1375_v48 }
  0xe7   :  { %v2053_v52 = vpop.f32.mrf.mxu0  ;;  %v1417_v47 = vadd.f32 %v1416_v51, %v2051_v49 }
  0xe8   :  { %v2055_v53 = vpop.f32.mrf.mxu1  ;;  %v838_v41 = vadd.f32 %v1377_v33, %v1212_v35 }
  0xe9   :  { %v1379_v54 = vpop.f32.mrf.mxu0 }
  0xea   :  { %v2057_v55 = vpop.f32.mrf.mxu1 }
  0xeb   :  { %v1381_v56 = vpop.f32.mrf.mxu0 }
  0xec   :  { %v1421_v57 = vpop.f32.mrf.mxu1 }
  0xed   :  { %v1382_v58 = vpop.f32.mrf.mxu0 }
  0xee   :  { %v1422_v59 = vpop.f32.mrf.mxu1  ;;  %v1383_v36 = vadd.f32 %v1382_v58, %v1381_v56  ;;  %v902_v58 = vadd.f32 %v1417_v47, %v838_v41 }
  0xef   :  { %v1384_v60 = vpop.f32.mrf.mxu0 }
  0xf0   :  { %v2059_v61 = vpop.f32.mrf.mxu1  ;;  %v846_v44 = vadd.f32 %v1383_v36, %v1212_v35 }
  0xf1   :  { %v1385_v62 = vpop.f32.mrf.mxu0 }
  0xf2   :  { %v2061_v63 = vpop.f32.mrf.mxu1  ;;  %v1386_v45 = vadd.f32 %v1385_v62, %v1384_v60 }
  0xf3   :  { %v1387_v0 = vpop.f32.mrf.mxu0 }
  0xf4   :  { %v2063_v1 = vpop.f32.mrf.mxu1  ;;  %v849_v60 = vadd.f32 %v1386_v45, %v1212_v35 }
  0xf5   :  { %v1388_v2 = vpop.f32.mrf.mxu0 }
  0xf6   :  { %v1428_v3 = vpop.f32.mrf.mxu1  ;;  %v1389_v42 = vadd.f32 %v1388_v2, %v1387_v0  ;;  %v1420_v0 = vadd.f32 %v2057_v55, %v2055_v53 }
  0xf7   :  { %v1390_v4 = vpop.f32.mrf.mxu0  ;;  %v1429_v49 = vadd.f32 %v1428_v3, %v2063_v1 }
  0xf8   :  { %v2065_v5 = vpop.f32.mrf.mxu1 }
  0xf9   :  { %v1391_v6 = vpop.f32.mrf.mxu0 }
  0xfa   :  { %v2067_v7 = vpop.f32.mrf.mxu1 }
  0xfb   :  { %v1393_v8 = vpop.f32.mrf.mxu0 }
  0xfc   :  { %v1433_v9 = vpop.f32.mrf.mxu1 }
  0xfd   :  { %v1394_v10 = vpop.f32.mrf.mxu0 }
  0xfe   :  { %v1434_v11 = vpop.f32.mrf.mxu1  ;;  %v1395_v38 = vadd.f32 %v1394_v10, %v1393_v8  ;;  %v854_v8 = vadd.f32 %v1389_v42, %v1212_v35  ;;  %v1392_v10 = vadd.f32 %v1391_v6, %v1390_v4 }
  0xff   :  { %v1396_v12 = vpop.f32.mrf.mxu0 }
 0x100   :  { %v1436_v13 = vpop.f32.mrf.mxu1  ;;  %v862_v48 = vadd.f32 %v1395_v38, %v1212_v35  ;;  %v1380_v12 = vadd.f32 %v1379_v54, %v2053_v52 }
 0x101   :  { %v1397_v14 = vpop.f32.mrf.mxu0  ;;  %v1423_v13 = vadd.f32 %v1422_v59, %v1421_v57  ;;  %v1426_v59 = vadd.f32 %v2061_v63, %v2059_v61 }
 0x102   :  { %v1437_v15 = vpop.f32.mrf.mxu1  ;;  %v841_v57 = vadd.f32 %v1380_v12, %v1212_v35 }
 0x103   :  { %v1455_v16 = vpop.f32.mrf.mxu0  ;;  %v1435_v15 = vadd.f32 %v1434_v11, %v1433_v9  ;;  %v910_v2 = vadd.f32 %v1423_v13, %v846_v44  ;;  %v918_v11 = vadd.f32 %v1429_v49, %v854_v8 }
 0x104   :  { %v2069_v17 = vpop.f32.mrf.mxu1  ;;  %v905_v63 = vadd.f32 %v1420_v0, %v841_v57 }
 0x105   :  { %v1456_v18 = vpop.f32.mrf.mxu0  ;;  %v926_v51 = vadd.f32 %v1435_v15, %v862_v48 }
 0x106   :  { %v2071_v19 = vpop.f32.mrf.mxu1  ;;  %v1457_v62 = vadd.f32 %v1456_v18, %v1455_v16  ;;  %v913_v16 = vadd.f32 %v1426_v59, %v849_v60 }
 0x107   :  { %v1458_v20 = vpop.f32.mrf.mxu0 }
 0x108   :  { %v2073_v21 = vpop.f32.mrf.mxu1  ;;  %v966_v18 = vadd.f32 %v1457_v62, %v902_v58 }
 0x109   :  { %v1459_v22 = vpop.f32.mrf.mxu0 }
 0x10a   :  { %v2075_v23 = vpop.f32.mrf.mxu1  ;;  %v1460_v41 = vadd.f32 %v1459_v22, %v1458_v20 }
 0x10b   :  { %v1461_v24 = vpop.f32.mrf.mxu0 }
 0x10c   :  { %v1501_v25 = vpop.f32.mrf.mxu1  ;;  %v969_v12 = vadd.f32 %v1460_v41, %v905_v63 }
 0x10d   :  { %v1462_v26 = vpop.f32.mrf.mxu0 }
 0x10e   :  { %v1502_v27 = vpop.f32.mrf.mxu1  ;;  %v1463_v14 = vadd.f32 %v1462_v26, %v1461_v24  ;;  %v857_v24 = vadd.f32 %v1392_v10, %v1212_v35 }
 0x10f   :  { %v1464_v28 = vpop.f32.mrf.mxu0  ;;  %v1503_v1 = vadd.f32 %v1502_v27, %v1501_v25 }
 0x110   :  { %v2077_v29 = vpop.f32.mrf.mxu1  ;;  %v974_v4 = vadd.f32 %v1463_v14, %v910_v2 }
 0x111   :  { %v1465_v30 = vpop.f32.mrf.mxu0 }
 0x112   :  { %v2079_v31 = vpop.f32.mrf.mxu1  ;;  %v1466_v6 = vadd.f32 %v1465_v30, %v1464_v28  ;;  %v1497_v28 = vadd.f32 %v2071_v19, %v2069_v17  ;;  %v1038_v35 = vadd.f32 %v1503_v1, %v974_v4  ;;  %v1500_v17 = vadd.f32 %v2075_v23, %v2073_v21 }
 0x113   :  { %v1467_v32 = vpop.f32.mrf.mxu0  ;;  %v1506_v20 = vadd.f32 %v2079_v31, %v2077_v29 }
 0x114   :  { %v1507_v34 = vpop.f32.mrf.mxu1  ;;  %v977_v30 = vadd.f32 %v1466_v6, %v913_v16  ;;  %v1033_v15 = vadd.f32 %v1500_v17, %v969_v12 }
 0x115   :  { %v1468_v37 = vpop.f32.mrf.mxu0 }
 0x116   :  { %v1508_v39 = vpop.f32.mrf.mxu1  ;;  %v1469_v38 = vadd.f32 %v1468_v37, %v1467_v32  ;;  %v1432_v32 = vadd.f32 %v2067_v7, %v2065_v5  ;;  %v1030_v7 = vadd.f32 %v1497_v28, %v966_v18 }
 0x117   :  { %v1470_v40 = vpop.f32.mrf.mxu0  ;;  %v1509_v47 = vadd.f32 %v1508_v39, %v1507_v34  ;;  %v1041_v39 = vadd.f32 %v1506_v20, %v977_v30 }
 0x118   :  { %v2084_v43 = vpop.f32.mrf.mxu1  ;;  %v982_v37 = vadd.f32 %v1469_v38, %v918_v11  ;;  %v921_v45 = vadd.f32 %v1432_v32, %v857_v24 }
 0x119   :  { %v1471_v46 = vpop.f32.mrf.mxu0 }
 0x11a   :  { %v1511_v50 = vpop.f32.mrf.mxu1  ;;  %v1472_v42 = vadd.f32 %v1471_v46, %v1470_v40  ;;  %v1046_v46 = vadd.f32 %v1509_v47, %v982_v37 }
 0x11b   :  { %v1473_v56 = vpop.f32.mrf.mxu0  ;;  %v1512_v14 = vadd.f32 %v1511_v50, %v2084_v43 }
 0x11c   :  { %v1513_v33 = vpop.f32.mrf.mxu1  ;;  %v985_v25 = vadd.f32 %v1472_v42, %v921_v45 }
 0x11d   :  { %v1474_v36 = vpop.f32.mrf.mxu0 }
 0x11e   :  { %v1475_v52 = vadd.f32 %v1474_v36, %v1473_v56  ;;  %v1514_v54 = vpop.f32.mrf.mxu1  ;;  %v1049_v2 = vadd.f32 %v1512_v14, %v985_v25 }
 0x11f   :  { %v1476_v9 = vpop.f32.mrf.mxu0  ;;  %v1515_v55 = vadd.f32 %v1514_v54, %v1513_v33 }
 0x120   :  { %v990_v53 = vadd.f32 %v1475_v52, %v926_v51  ;;  %v1516_v26 = vpop.f32.mrf.mxu1 }
 0x121   :  { %v1477_v3 = vpop.f32.mrf.mxu0 }
 0x122   :  { %v1517_v44 = vpop.f32.mrf.mxu1  ;;  %v1054_v61 = vadd.f32 %v1515_v55, %v990_v53 }
 0x124   :  { %v1549_v48 = vpop.f32.mrf.mxu0 }
 0x125   :  { %v2099_v22 = vadd.f32 %v1549_v48, %v1038_v35  ;;  %v1553_v5 = vpop.f32.mrf.mxu1 }
 0x126   :  { %v1118_v27 = vadd.f32 %v1553_v5, %v1054_v61  ;;  %v1093_v40 = vpop.f32.mrf.mxu0 }
 0x127   :  { %v1323_v19 = vmul.f32 -1.442695, %v2099_v22  ;;  %v1094_v13 = vadd.f32 %v1093_v40, %v1030_v7  ;;  %v1109_v34 = vpop.f32.mrf.mxu1 }
 0x128   :  { %v1327_v56 = vmul.f32 -1.442695, %v1118_v27  ;;  %v1110_v29 = vadd.f32 %v1109_v34, %v1046_v46  ;;  %v1550_v31 = vpop.f32.mrf.mxu0 }
 0x129   :  { %1691 = vpow2.f32 %v1323_v19  ;;  %v1321_v58 = vmul.f32 -1.442695, %v1094_v13  ;;  %v1105_v8 = vadd.f32 %v1550_v31, %v1041_v39  ;;  %v1554_v10 = vpop.f32.mrf.mxu1 }
 0x12a   :  { %1693 = vpow2.f32 %v1327_v56  ;;  %v1325_v33 = vmul.f32 -1.442695, %v1110_v29  ;;  %v1096_v0 = vpop.f32.mrf.mxu0 }
 0x12b   :  { %1695 = vpow2.f32 %v1321_v58  ;;  %v1324_v21 = vmul.f32 -1.442695, %v1105_v8  ;;  %v1097_v23 = vadd.f32 %v1096_v0, %v1033_v15  ;;  %v1112_v60 = vpop.f32.mrf.mxu1 }
 0x12c   :  { %1697 = vpow2.f32 %v1325_v33  ;;  %v1113_v62 = vadd.f32 %v1112_v60, %v1049_v2 }
 0x12d   :  { %1699 = vpow2.f32 %v1324_v21  ;;  %v1322_v43 = vmul.f32 -1.442695, %v1097_v23 }
 0x12e   :  { %v1326_v50 = vmul.f32 -1.442695, %v1113_v62 }
 0x12f   :  { %1701 = vpow2.f32 %v1322_v43 }
 0x130   :  { %1703 = vpow2.f32 %v1326_v50 }
 0x136   :  { %v1692_v36 = vpop.eup %1691 }
 0x137   :  { %v1694_v49 = vpop.eup %1693  ;;  %v1146_v51 = vadd.f32 1.0, %v1692_v36 }
 0x138   :  { %v1696_v38 = vpop.eup %1695  ;;  %v1150_v52 = vadd.f32 1.0, %v1694_v49 }
 0x139   :  { %v1698_v54 = vpop.eup %1697  ;;  %v1144_v57 = vadd.f32 1.0, %v1696_v38 }
 0x13a   :  { %v1700_v59 = vpop.eup %1699  ;;  %1705 = vrcp.f32 %v1150_v52  ;;  %v1148_v4 = vadd.f32 1.0, %v1698_v54 }
 0x13b   :  { %1707 = vrcp.f32 %v1146_v51  ;;  %v1147_v6 = vadd.f32 1.0, %v1700_v59 }
 0x13c   :  { %v1702_v9 = vpop.eup %1701  ;;  %1709 = vrcp.f32 %v1144_v57 }
 0x13d   :  { %v1704_v11 = vpop.eup %1703  ;;  %1711 = vrcp.f32 %v1147_v6  ;;  %v1145_v24 = vadd.f32 1.0, %v1702_v9 }
 0x13e   :  { %1713 = vrcp.f32 %v1148_v4  ;;  %v1149_v53 = vadd.f32 1.0, %v1704_v11 }
 0x13f   :  { %1715 = vrcp.f32 %v1145_v24 }
 0x140   :  { %1717 = vrcp.f32 %v1149_v53 }
 0x147   :  { %v1706_v55 = vpop.eup %1705 }
 0x148   :  { %v1708_v26 = vpop.eup %1707  ;;  %v1171_v16 = vmul.f32 %v1706_v55, %v1118_v27 }
 0x149   :  { %v1710_v18 = vpop.eup %1709  ;;  %v1167_v32 = vmul.f32 %v1708_v26, %v2099_v22 }
 0x14a   :  { %v1712_v41 = vpop.eup %1711  ;;  %v1341_v1 = vpack.c.bf16 %v1171_v16, %v1171_v16  ;;  %v1165_v61 = vmul.f32 %v1710_v18, %v1094_v13 }
 0x14b   :  { %v1714_v3 = vpop.eup %1713  ;;  %v1168_v37 = vmul.f32 %v1712_v41, %v1105_v8 }
 0x14c   :  { %v1716_v42 = vpop.eup %1715  ;;  %1207 = vst [vmem:[%s2121_s3 + $0x18] sm:$0xf] %v1341_v1  ;;  %v1169_v30 = vmul.f32 %v1714_v3, %v1110_v29 }
 0x14d   :  { %v1718_v44 = vpop.eup %1717  ;;  %v1350_v63 = vpack.c.bf16 %v1168_v37, %v1167_v32  ;;  %v1166_v28 = vmul.f32 %v1716_v42, %v1097_v23 }
 0x14e   :  { %v1170_v35 = vmul.f32 %v1718_v44, %v1113_v62 }
 0x14f   :  { %1357 = vst [vmem:[%s2121_s3 + $0x8] sm:$0xff] %v1350_v63   ;;  %v1345_v45 = vpack.c.bf16 %v1166_v28, %v1165_v61 }
 0x150   :  { %v1355_v47 = vpack.c.bf16 %v1170_v35, %v1169_v30 }
 0x151   :  { %1346 = vst [vmem:[%s2121_s3] sm:$0xff] %v1345_v45  }
 0x152   :  { %1358 = vst [vmem:[%s2121_s3 + $0x10] sm:$0xff] %v1355_v47  }

// kernel: shallow_cnn_forward.8
= control target key start
LH: loop header
LB: loop body
LE: loop exit
PB: predicated region body
PF: predicated region fallthrough
CT: control target
= control target key end

     0   :  { %vm1136_vm0 = vmmov 0   ;;  %s1394_s1 = inlined_call_operand.vmem [shape: bf16[1152,128], index: 1, kind: input, shape index: {}]   ;;  %s1395_s0 = inlined_call_operand.vmem [shape: bf16[8,1152], index: 0, kind: input, shape index: {}]   ;;  %s1396_s2 = inlined_call_operand.vmem [shape: f32[1,128], index: 2, kind: input, shape index: {}]   ;;  %s1397_s3 = inlined_call_operand.vmem [shape: bf16[8,128], index: 3, kind: output, shape index: {}]  }
   0x1   :  { %v1050_v0 = vld [vmem:[%s1394_s1 + $0x78] sm:$0xff]   ;;  %v1054_v4 = vld [vmem:[%s1394_s1 + $0x70] sm:$0xff]   ;;  %v1058_v8 = vld [vmem:[%s1394_s1 + $0x68] sm:$0xff]  }
   0x2   :  { %v1051_v1 = vld [vmem:[%s1394_s1 + $0x38] sm:$0xff]   ;;  %931 = vmatprep.subr.bf16.mxu0 %v1050_v0  ;;  %v1055_v5 = vld [vmem:[%s1394_s1 + $0x30] sm:$0xff]   ;;  %v1059_v9 = vld [vmem:[%s1394_s1 + $0x28] sm:$0xff]  }
   0x3   :  { %v1052_v2 = vld [vmem:[%s1394_s1 + $0xf8] sm:$0xff]   ;;  %932 = vmatpush3.bf16.msra.mxu0 %v1051_v1  ;;  %v1056_v6 = vld [vmem:[%s1394_s1 + $0xf0] sm:$0xff]   ;;  %v1060_v10 = vld [vmem:[%s1394_s1 + $0xe8] sm:$0xff]  }
   0x4   :  { %v1053_v3 = vld [vmem:[%s1394_s1 + $0xb8] sm:$0xff]   ;;  %953 = vmatprep.subr.bf16.mxu1 %v1052_v2  ;;  %933 = vmatprep.subr.bf16.mxu0 %v1054_v4  ;;  %v1057_v7 = vld [vmem:[%s1394_s1 + $0xb0] sm:$0xff]   ;;  %v1061_v11 = vld [vmem:[%s1394_s1 + $0xa8] sm:$0xff]  }
   0x5   :  { %954 = vmatpush3.bf16.msra.mxu1 %v1053_v3  ;;  %v1062_v12 = vld [vmem:[%s1394_s1 + $0x60] sm:$0xff]   ;;  %v1066_v16 = vld [vmem:[%s1394_s1 + $0x58] sm:$0xff]   ;;  %v1070_v20 = vld [vmem:[%s1394_s1 + $0x50] sm:$0xff]  }
   0x6   :  { %955 = vmatprep.subr.bf16.mxu1 %v1056_v6  ;;  %v1063_v13 = vld [vmem:[%s1394_s1 + $0x20] sm:$0xff]   ;;  %v1067_v17 = vld [vmem:[%s1394_s1 + $0x18] sm:$0xff]   ;;  %v1071_v21 = vld [vmem:[%s1394_s1 + $0x10] sm:$0xff]  }
   0x7   :  { %934 = vmatpush3.bf16.msra.mxu0 %v1055_v5  ;;  %v1064_v14 = vld [vmem:[%s1394_s1 + $0xe0] sm:$0xff]   ;;  %v1068_v18 = vld [vmem:[%s1394_s1 + $0xd8] sm:$0xff]   ;;  %v1072_v22 = vld [vmem:[%s1394_s1 + $0xd0] sm:$0xff]  }
   0x8   :  { %935 = vmatprep.subr.bf16.mxu0 %v1058_v8  ;;  %v1065_v15 = vld [vmem:[%s1394_s1 + $0xa0] sm:$0xff]   ;;  %v1069_v19 = vld [vmem:[%s1394_s1 + $0x98] sm:$0xff]   ;;  %v1073_v23 = vld [vmem:[%s1394_s1 + $0x90] sm:$0xff]  }
   0x9   :  { %956 = vmatpush3.bf16.msra.mxu1 %v1057_v7  ;;  %v1074_v24 = vld [vmem:[%s1394_s1 + $0x48] sm:$0xff]   ;;  %v1078_v28 = vld [vmem:[%s1394_s1 + $0x40] sm:$0xff]   ;;  %v1084_v35 = vld [vmem:[%s1394_s1 + $0x178] sm:$0xff]  }
   0xa   :  { %957 = vmatprep.subr.bf16.mxu1 %v1060_v10  ;;  %v1075_v25 = vld [vmem:[%s1394_s1 + $0x8] sm:$0xff]   ;;  %v1079_v29 = vld [vmem:[%s1394_s1] sm:$0xff]   ;;  %v1087_v39 = vld [vmem:[%s1394_s1 + $0x138] sm:$0xff]  }
   0xb   :  { %936 = vmatpush3.bf16.msra.mxu0 %v1059_v9  ;;  %v1076_v26 = vld [vmem:[%s1394_s1 + $0xc8] sm:$0xff]   ;;  %v1080_v30 = vld [vmem:[%s1394_s1 + $0xc0] sm:$0xff]   ;;  %v1088_v40 = vld [vmem:[%s1394_s1 + $0x1f8] sm:$0xff]   ;;  %v1135_v9 = vmov 0.0  }
   0xc   :  { %937 = vmatprep.subr.bf16.mxu0 %v1062_v12  ;;  %v1077_v27 = vld [vmem:[%s1394_s1 + $0x88] sm:$0xff]   ;;  %v15_v31 = vld [vmem:[%s1395_s0] sm:$0xff]  ;;  %v1089_v41 = vld [vmem:[%s1394_s1 + $0x1b8] sm:$0xff]  }
   0xd   :  { %958 = vmatpush3.bf16.msra.mxu1 %v1061_v11  ;;  %v849_v32 = vcombine.low %v15_v31, %v15_v31  ;;  %v850_v33 = vcombine.high %v15_v31, %v15_v31  ;;  %v1083_v34 = vld [vmem:[%s1394_s1 + $0x80] sm:$0xff]   ;;  %v16_v36 = vld [vmem:[%s1395_s0 + $0x8] sm:$0xff]  ;;  %v1090_v42 = vld [vmem:[%s1394_s1 + $0x170] sm:$0xff]  }
   0xe   :  { %959 = vmatprep.subr.bf16.mxu1 %v1064_v14  ;;  %v851_v37 = vcombine.low %v16_v36, %v16_v36  ;;  %v852_v38 = vcombine.high %v16_v36, %v16_v36  ;;  %v1091_v43 = vld [vmem:[%s1394_s1 + $0x130] sm:$0xff]   ;;  %v1094_v46 = vld [vmem:[%s1394_s1 + $0x168] sm:$0xff]   ;;  %v1098_v50 = vld [vmem:[%s1394_s1 + $0x160] sm:$0xff]  }
   0xf   :  { %938 = vmatpush3.bf16.msra.mxu0 %v1063_v13  ;;  %667 = vmatprep.mubr.bf16.mxu0 %v850_v33  ;;  %v1092_v44 = vld [vmem:[%s1394_s1 + $0x1f0] sm:$0xff]   ;;  %v1095_v47 = vld [vmem:[%s1394_s1 + $0x128] sm:$0xff]   ;;  %v1099_v51 = vld [vmem:[%s1394_s1 + $0x120] sm:$0xff]  }
  0x10   :  { %939 = vmatprep.subr.bf16.mxu0 %v1066_v16  ;;  %707 = vmatprep.mubr.bf16.mxu1 %v852_v38  ;;  %v1093_v45 = vld [vmem:[%s1394_s1 + $0x1b0] sm:$0xff]   ;;  %v1096_v48 = vld [vmem:[%s1394_s1 + $0x1e8] sm:$0xff]   ;;  %v1100_v52 = vld [vmem:[%s1394_s1 + $0x1e0] sm:$0xff]  }
  0x11   :  { %960 = vmatpush3.bf16.msra.mxu1 %v1065_v15  ;;  %v1097_v49 = vld [vmem:[%s1394_s1 + $0x1a8] sm:$0xff]   ;;  %v1101_v53 = vld [vmem:[%s1394_s1 + $0x1a0] sm:$0xff]   ;;  %v1102_v54 = vld [vmem:[%s1394_s1 + $0x158] sm:$0xff]  }
  0x12   :  { %961 = vmatprep.subr.bf16.mxu1 %v1068_v18  ;;  %v1103_v55 = vld [vmem:[%s1394_s1 + $0x118] sm:$0xff]   ;;  %v1106_v58 = vld [vmem:[%s1394_s1 + $0x150] sm:$0xff]   ;;  %v1110_v62 = vld [vmem:[%s1394_s1 + $0x148] sm:$0xff]  }
  0x13   :  { %940 = vmatpush3.bf16.msra.mxu0 %v1067_v17  ;;  %v1104_v56 = vld [vmem:[%s1394_s1 + $0x1d8] sm:$0xff]   ;;  %v1107_v59 = vld [vmem:[%s1394_s1 + $0x110] sm:$0xff]   ;;  %v1111_v63 = vld [vmem:[%s1394_s1 + $0x108] sm:$0xff]  }
  0x14   :  { %941 = vmatprep.subr.bf16.mxu0 %v1070_v20  ;;  %v1105_v57 = vld [vmem:[%s1394_s1 + $0x198] sm:$0xff]   ;;  %v1108_v60 = vld [vmem:[%s1394_s1 + $0x1d0] sm:$0xff]   ;;  %v1112_v0 = vld [vmem:[%s1394_s1 + $0x1c8] sm:$0xff]  }
  0x15   :  { %962 = vmatpush3.bf16.msra.mxu1 %v1069_v19  ;;  %v1109_v61 = vld [vmem:[%s1394_s1 + $0x190] sm:$0xff]   ;;  %v1113_v1 = vld [vmem:[%s1394_s1 + $0x188] sm:$0xff]   ;;  %v1114_v2 = vld [vmem:[%s1394_s1 + $0x140] sm:$0xff]  }
  0x16   :  { %963 = vmatprep.subr.bf16.mxu1 %v1072_v22  ;;  %v1115_v3 = vld [vmem:[%s1394_s1 + $0x100] sm:$0xff]   ;;  %v17_v5 = vld [vmem:[%s1395_s0 + $0x10] sm:$0xff]  ;;  %v18_v10 = vld [vmem:[%s1395_s0 + $0x18] sm:$0xff] }
  0x17   :  { %942 = vmatpush3.bf16.msra.mxu0 %v1071_v21  ;;  %v1116_v4 = vld [vmem:[%s1394_s1 + $0x1c0] sm:$0xff]   ;;  %v853_v6 = vcombine.low %v17_v5, %v17_v5  ;;  %v854_v7 = vcombine.high %v17_v5, %v17_v5  ;;  %v855_v11 = vcombine.low %v18_v10, %v18_v10  ;;  %v856_v12 = vcombine.high %v18_v10, %v18_v10  ;;  %v1122_v13 = vld [vmem:[%s1394_s1 + $0x238] sm:$0xff]   ;;  %v1123_v14 = vld [vmem:[%s1394_s1 + $0x230] sm:$0xff]  }
  0x18   :  { %943 = vmatprep.subr.bf16.mxu0 %v1074_v24  ;;  %v1119_v8 = vld [vmem:[%s1394_s1 + $0x180] sm:$0xff]   ;;  %v1124_v15 = vld [vmem:[%s1394_s1 + $0x228] sm:$0xff]   ;;  %v1126_v17 = vld [vmem:[%s1394_s1 + $0x218] sm:$0xff]  }
  0x19   :  { %964 = vmatpush3.bf16.msra.mxu1 %v1073_v23  ;;  %v1125_v16 = vld [vmem:[%s1394_s1 + $0x220] sm:$0xff]   ;;  %v1127_v18 = vld [vmem:[%s1394_s1 + $0x210] sm:$0xff]   ;;  %v1128_v19 = vld [vmem:[%s1394_s1 + $0x208] sm:$0xff]  }
  0x1a   :  { %965 = vmatprep.subr.bf16.mxu1 %v1076_v26  ;;  %v1129_v20 = vld [vmem:[%s1394_s1 + $0x200] sm:$0xff]  }
  0x1b   :  { %944 = vmatpush3.bf16.msra.mxu0 %v1075_v25  ;;  %v1130_v21 = vld [vmem:[%s1395_s0 + $0x20] ss:$0 sps:$4 sm:$0xff]  }
  0x1c   :  { %945 = vmatprep.subr.bf16.mxu0 %v1078_v28 }
  0x1d   :  { %966 = vmatpush3.bf16.msra.mxu1 %v1077_v27 }
  0x1e   :  { %967 = vmatprep.subr.bf16.mxu1 %v1080_v30 }
  0x1f   :  { %946 = vmatpush3.bf16.msra.mxu0 %v1079_v29 }
  0x20   :  { %975 = vmatprep.subr.bf16.mxu0 %v1084_v35 }
  0x21   :  { %968 = vmatpush3.bf16.msra.mxu1 %v1083_v34 }
  0x22   :  { %668 = vmatmul.mubr.bf16.vlgmr.msra.gmra.mxu0 %v849_v32  ;;  %997 = vmatprep.subr.bf16.mxu1 %v1088_v40 }
  0x23   :  { %976 = vmatpush3.bf16.msra.mxu0 %v1087_v39  ;;  %747 = vmatprep.mubr.bf16.mxu0 %v854_v7  ;;  %v848_v39 = vld [vmem:[%s1396_s2] ss:$0 sm:$0xff] }
  0x24   :  { %708 = vmatmul.mubr.bf16.vlgmr.msra.gmra.mxu1 %v851_v37  ;;  %977 = vmatprep.subr.bf16.mxu0 %v1090_v42 }
  0x25   :  { %998 = vmatpush3.bf16.msra.mxu1 %v1089_v41  ;;  %787 = vmatprep.mubr.bf16.mxu1 %v856_v12 }
  0x26   :  { %999 = vmatprep.subr.bf16.mxu1 %v1092_v44 }
  0x27   :  { %978 = vmatpush3.bf16.msra.mxu0 %v1091_v43 }
  0x28   :  { %979 = vmatprep.subr.bf16.mxu0 %v1094_v46 }
  0x29   :  { %1000 = vmatpush3.bf16.msra.mxu1 %v1093_v45 }
  0x2a   :  { %1001 = vmatprep.subr.bf16.mxu1 %v1096_v48 }
  0x2b   :  { %980 = vmatpush3.bf16.msra.mxu0 %v1095_v47 }
  0x2c   :  { %981 = vmatprep.subr.bf16.mxu0 %v1098_v50 }
  0x2d   :  { %1002 = vmatpush3.bf16.msra.mxu1 %v1097_v49 }
  0x2e   :  { %1003 = vmatprep.subr.bf16.mxu1 %v1100_v52 }
  0x2f   :  { %982 = vmatpush3.bf16.msra.mxu0 %v1099_v51 }
  0x30   :  { %983 = vmatprep.subr.bf16.mxu0 %v1102_v54 }
  0x31   :  { %1004 = vmatpush3.bf16.msra.mxu1 %v1101_v53 }
  0x32   :  { %1005 = vmatprep.subr.bf16.mxu1 %v1104_v56 }
  0x33   :  { %984 = vmatpush3.bf16.msra.mxu0 %v1103_v55 }
  0x34   :  { %985 = vmatprep.subr.bf16.mxu0 %v1106_v58 }
  0x35   :  { %1006 = vmatpush3.bf16.msra.mxu1 %v1105_v57 }
  0x36   :  { %1007 = vmatprep.subr.bf16.mxu1 %v1108_v60 }
  0x37   :  { %986 = vmatpush3.bf16.msra.mxu0 %v1107_v59 }
  0x38   :  { %987 = vmatprep.subr.bf16.mxu0 %v1110_v62 }
  0x39   :  { %1008 = vmatpush3.bf16.msra.mxu1 %v1109_v61 }
  0x3a   :  { %1009 = vmatprep.subr.bf16.mxu1 %v1112_v0 }
  0x3b   :  { %988 = vmatpush3.bf16.msra.mxu0 %v1111_v63 }
  0x3c   :  { %989 = vmatprep.subr.bf16.mxu0 %v1114_v2 }
  0x3d   :  { %1010 = vmatpush3.bf16.msra.mxu1 %v1113_v1 }
  0x3e   :  { %1011 = vmatprep.subr.bf16.mxu1 %v1116_v4 }
  0x3f   :  { %990 = vmatpush3.bf16.msra.mxu0 %v1115_v3 }
  0x40   :  { %1028 = vmatprep.subr.bf16.mxu0 %v1135_v9 }
  0x41   :  { %1012 = vmatpush3.bf16.msra.mxu1 %v1119_v8 }
  0x42   :  { %748 = vmatmul.mubr.bf16.vlgmr.msra.gmra.mxu0 %v853_v6 }
  0x43   :  { %1029 = vmatpush3.bf16.msra.mxu0 %v1122_v13  ;;  %1044 = vmatprep.mubr.msk.bf16.mxu0 %vm1136_vm0, %v1135_v9 }
  0x44   :  { %788 = vmatmul.mubr.bf16.vlgmr.msra.gmra.mxu1 %v855_v11  ;;  %1030 = vmatprep.subr.bf16.mxu0 %v1135_v9 }
  0x47   :  { %1031 = vmatpush3.bf16.msra.mxu0 %v1123_v14 }
  0x48   :  { %1032 = vmatprep.subr.bf16.mxu0 %v1135_v9 }
  0x4b   :  { %1033 = vmatpush3.bf16.msra.mxu0 %v1124_v15 }
  0x4c   :  { %1034 = vmatprep.subr.bf16.mxu0 %v1135_v9 }
  0x4f   :  { %1035 = vmatpush3.bf16.msra.mxu0 %v1125_v16 }
  0x50   :  { %1036 = vmatprep.subr.bf16.mxu0 %v1135_v9 }
  0x53   :  { %1037 = vmatpush3.bf16.msra.mxu0 %v1126_v17 }
  0x54   :  { %1038 = vmatprep.subr.bf16.mxu0 %v1135_v9 }
  0x57   :  { %1039 = vmatpush3.bf16.msra.mxu0 %v1127_v18 }
  0x58   :  { %1040 = vmatprep.subr.bf16.mxu0 %v1135_v9 }
  0x5b   :  { %1041 = vmatpush3.bf16.msra.mxu0 %v1128_v19 }
  0x5c   :  { %1042 = vmatprep.subr.bf16.mxu0 %v1135_v9 }
  0x5f   :  { %1043 = vmatpush3.bf16.msra.mxu0 %v1129_v20 }
  0x62   :  { %1045 = vmatmul.mubr.bf16.vlgmr.msra.gmra.mxu0 %v1130_v21 }
  0xe2   :  { %v947_v22 = vpop.f32.mrf.mxu0 }
  0xe4   :  { %v948_v23 = vpop.f32.mrf.mxu0  ;;  %v969_v24 = vpop.f32.mrf.mxu1 }
  0xe5   :  { %v949_v38 = vadd.f32 %v948_v23, %v947_v22 }
  0xe6   :  { %v950_v25 = vpop.f32.mrf.mxu0  ;;  %v970_v26 = vpop.f32.mrf.mxu1 }
  0xe7   :  { %v670_v40 = vadd.f32 %v949_v38, %v848_v39  ;;  %v971_v41 = vadd.f32 %v970_v26, %v969_v24 }
  0xe8   :  { %v951_v27 = vpop.f32.mrf.mxu0  ;;  %v972_v28 = vpop.f32.mrf.mxu1 }
  0xe9   :  { %v710_v43 = vadd.f32 %v971_v41, %v670_v40 }
  0xea   :  { %v973_v29 = vpop.f32.mrf.mxu1 }
 0x102   :  { %v991_v30 = vpop.f32.mrf.mxu0 }
 0x104   :  { %v992_v31 = vpop.f32.mrf.mxu0  ;;  %v1013_v32 = vpop.f32.mrf.mxu1 }
 0x105   :  { %v993_v42 = vadd.f32 %v992_v31, %v991_v30 }
 0x106   :  { %v994_v33 = vpop.f32.mrf.mxu0  ;;  %v1014_v34 = vpop.f32.mrf.mxu1 }
 0x107   :  { %v750_v44 = vadd.f32 %v993_v42, %v710_v43  ;;  %v1015_v45 = vadd.f32 %v1014_v34, %v1013_v32 }
 0x108   :  { %v995_v35 = vpop.f32.mrf.mxu0  ;;  %v1016_v36 = vpop.f32.mrf.mxu1 }
 0x109   :  { %v790_v46 = vadd.f32 %v1015_v45, %v750_v44 }
 0x10a   :  { %v1017_v37 = vpop.f32.mrf.mxu1 }
 0x122   :  { %v829_v47 = vpop.f32.mrf.mxu0 }
 0x123   :  { %v830_v48 = vadd.f32 %v829_v47, %v790_v46 }
 0x124   :  { %v1046_v49 = vpop.f32.mrf.mxu0 }
 0x125   :  { %v930_v50 = vmul.f32 -1.442695, %v830_v48 }
 0x126   :  { %v832_v51 = vpop.f32.mrf.mxu0 }
 0x127   :  { %1131 = vpow2.f32 %v930_v50 }
 0x128   :  { %v1047_v52 = vpop.f32.mrf.mxu0 }
 0x134   :  { %v1132_v53 = vpop.eup %1131 }
 0x135   :  { %v838_v54 = vadd.f32 1.0, %v1132_v53 }
 0x137   :  { %1133 = vrcp.f32 %v838_v54 }
 0x144   :  { %v1134_v55 = vpop.eup %1133 }
 0x145   :  { %v841_v56 = vmul.f32 %v1134_v55, %v830_v48 }
 0x147   :  { %v842_v57 = vpack.c.bf16 %v841_v56, %v841_v56 }
 0x149   :  { %843 = vst [vmem:[%s1397_s3] sm:$0xf] %v842_v57 }

// kernel: shallow_cnn_forward.7
= control target key start
LH: loop header
LB: loop body
LE: loop exit
PB: predicated region body
PF: predicated region fallthrough
CT: control target
= control target key end

     0   :  { %s1612_s1 = inlined_call_operand.vmem [shape: bf16[1152,128], index: 1, kind: input, shape index: {}]   ;;  %s1613_s0 = inlined_call_operand.vmem [shape: bf16[24,1152], index: 0, kind: input, shape index: {}]   ;;  %s1614_s2 = inlined_call_operand.vmem [shape: f32[1,128], index: 2, kind: input, shape index: {}]   ;;  %s1615_s3 = inlined_call_operand.vmem [shape: bf16[24,128], index: 3, kind: output, shape index: {}]  }
   0x1   :  { %v1219_v0 = vld [vmem:[%s1612_s1 + $0x78] sm:$0xff]   ;;  %v1223_v4 = vld [vmem:[%s1612_s1 + $0x70] sm:$0xff]   ;;  %v1227_v8 = vld [vmem:[%s1612_s1 + $0x68] sm:$0xff]  }
   0x2   :  { %v1220_v1 = vld [vmem:[%s1612_s1 + $0x38] sm:$0xff]   ;;  %1077 = vmatprep.subr.bf16.mxu0 %v1219_v0  ;;  %v1224_v5 = vld [vmem:[%s1612_s1 + $0x30] sm:$0xff]   ;;  %v1228_v9 = vld [vmem:[%s1612_s1 + $0x28] sm:$0xff]  }
   0x3   :  { %v1221_v2 = vld [vmem:[%s1612_s1 + $0xf8] sm:$0xff]   ;;  %1078 = vmatpush3.bf16.msra.mxu0 %v1220_v1  ;;  %v1225_v6 = vld [vmem:[%s1612_s1 + $0xf0] sm:$0xff]   ;;  %v1229_v10 = vld [vmem:[%s1612_s1 + $0xe8] sm:$0xff]  }
   0x4   :  { %v1222_v3 = vld [vmem:[%s1612_s1 + $0xb8] sm:$0xff]   ;;  %1105 = vmatprep.subr.bf16.mxu1 %v1221_v2  ;;  %1079 = vmatprep.subr.bf16.mxu0 %v1223_v4  ;;  %v1226_v7 = vld [vmem:[%s1612_s1 + $0xb0] sm:$0xff]   ;;  %v1230_v11 = vld [vmem:[%s1612_s1 + $0xa8] sm:$0xff]  }
   0x5   :  { %1106 = vmatpush3.bf16.msra.mxu1 %v1222_v3  ;;  %v1231_v12 = vld [vmem:[%s1612_s1 + $0x60] sm:$0xff]   ;;  %v1235_v16 = vld [vmem:[%s1612_s1 + $0x58] sm:$0xff]   ;;  %v1239_v20 = vld [vmem:[%s1612_s1 + $0x50] sm:$0xff]  }
   0x6   :  { %1107 = vmatprep.subr.bf16.mxu1 %v1225_v6  ;;  %v1232_v13 = vld [vmem:[%s1612_s1 + $0x20] sm:$0xff]   ;;  %v1236_v17 = vld [vmem:[%s1612_s1 + $0x18] sm:$0xff]   ;;  %v1240_v21 = vld [vmem:[%s1612_s1 + $0x10] sm:$0xff]  }
   0x7   :  { %1080 = vmatpush3.bf16.msra.mxu0 %v1224_v5  ;;  %v1233_v14 = vld [vmem:[%s1612_s1 + $0xe0] sm:$0xff]   ;;  %v1237_v18 = vld [vmem:[%s1612_s1 + $0xd8] sm:$0xff]   ;;  %v1241_v22 = vld [vmem:[%s1612_s1 + $0xd0] sm:$0xff]  }
   0x8   :  { %1081 = vmatprep.subr.bf16.mxu0 %v1227_v8  ;;  %v1234_v15 = vld [vmem:[%s1612_s1 + $0xa0] sm:$0xff]   ;;  %v1238_v19 = vld [vmem:[%s1612_s1 + $0x98] sm:$0xff]   ;;  %v1242_v23 = vld [vmem:[%s1612_s1 + $0x90] sm:$0xff]  }
   0x9   :  { %1108 = vmatpush3.bf16.msra.mxu1 %v1226_v7  ;;  %v1243_v24 = vld [vmem:[%s1612_s1 + $0x48] sm:$0xff]   ;;  %v1247_v28 = vld [vmem:[%s1612_s1 + $0x40] sm:$0xff]   ;;  %v1254_v34 = vld [vmem:[%s1612_s1 + $0x178] sm:$0xff]  }
   0xa   :  { %1109 = vmatprep.subr.bf16.mxu1 %v1229_v10  ;;  %v1244_v25 = vld [vmem:[%s1612_s1 + $0x8] sm:$0xff]   ;;  %v1248_v29 = vld [vmem:[%s1612_s1] sm:$0xff]   ;;  %v1258_v37 = vld [vmem:[%s1612_s1 + $0x138] sm:$0xff]  }
   0xb   :  { %1082 = vmatpush3.bf16.msra.mxu0 %v1228_v9  ;;  %v1245_v26 = vld [vmem:[%s1612_s1 + $0xc8] sm:$0xff]   ;;  %v1249_v30 = vld [vmem:[%s1612_s1 + $0xc0] sm:$0xff]   ;;  %v1259_v38 = vld [vmem:[%s1612_s1 + $0x1f8] sm:$0xff]  }
   0xc   :  { %1083 = vmatprep.subr.bf16.mxu0 %v1231_v12  ;;  %v1246_v27 = vld [vmem:[%s1612_s1 + $0x88] sm:$0xff]   ;;  %v1250_v31 = vld [vmem:[%s1613_s0] ss:$36 sps:$4 sm:$0xff]   ;;  %v1260_v39 = vld [vmem:[%s1612_s1 + $0x1b8] sm:$0xff]  }
   0xd   :  { %1110 = vmatpush3.bf16.msra.mxu1 %v1230_v11  ;;  %v1252_v32 = vld [vmem:[%s1613_s0 + $0x4] ss:$36 sps:$4 sm:$0xff]   ;;  %v1257_v36 = vld [vmem:[%s1613_s0 + $0xc] ss:$36 sps:$4 sm:$0xff]   ;;  %v1273_v52 = vld [vmem:[%s1612_s1 + $0x158] sm:$0xff]  }
   0xe   :  { %1111 = vmatprep.subr.bf16.mxu1 %v1233_v14  ;;  %v1253_v33 = vld [vmem:[%s1612_s1 + $0x80] sm:$0xff]   ;;  %723 = vmatprep.mubr.bf16.mxu0 %v1252_v32  ;;  %v1255_v35 = vld [vmem:[%s1613_s0 + $0x8] ss:$36 sps:$4 sm:$0xff]   ;;  %v1261_v40 = vld [vmem:[%s1612_s1 + $0x170] sm:$0xff]  }
   0xf   :  { %1084 = vmatpush3.bf16.msra.mxu0 %v1232_v13  ;;  %771 = vmatprep.mubr.bf16.mxu1 %v1257_v36  ;;  %v1262_v41 = vld [vmem:[%s1612_s1 + $0x130] sm:$0xff]   ;;  %v1265_v44 = vld [vmem:[%s1612_s1 + $0x168] sm:$0xff]   ;;  %v1269_v48 = vld [vmem:[%s1612_s1 + $0x160] sm:$0xff]  }
  0x10   :  { %1085 = vmatprep.subr.bf16.mxu0 %v1235_v16  ;;  %v1263_v42 = vld [vmem:[%s1612_s1 + $0x1f0] sm:$0xff]   ;;  %v1266_v45 = vld [vmem:[%s1612_s1 + $0x128] sm:$0xff]   ;;  %v1270_v49 = vld [vmem:[%s1612_s1 + $0x120] sm:$0xff]  }
  0x11   :  { %1112 = vmatpush3.bf16.msra.mxu1 %v1234_v15  ;;  %v1264_v43 = vld [vmem:[%s1612_s1 + $0x1b0] sm:$0xff]   ;;  %v1267_v46 = vld [vmem:[%s1612_s1 + $0x1e8] sm:$0xff]   ;;  %v1271_v50 = vld [vmem:[%s1612_s1 + $0x1e0] sm:$0xff]  }
  0x12   :  { %1113 = vmatprep.subr.bf16.mxu1 %v1237_v18  ;;  %v1268_v47 = vld [vmem:[%s1612_s1 + $0x1a8] sm:$0xff]   ;;  %v1272_v51 = vld [vmem:[%s1612_s1 + $0x1a0] sm:$0xff]   ;;  %v1274_v53 = vld [vmem:[%s1612_s1 + $0x118] sm:$0xff]  }
  0x13   :  { %1086 = vmatpush3.bf16.msra.mxu0 %v1236_v17  ;;  %v25_v54 = vld [vmem:[%s1613_s0 + $0x48] sm:$0xff]  ;;  %v1276_v56 = vld [vmem:[%s1612_s1 + $0x1d8] sm:$0xff]   ;;  %v1279_v59 = vld [vmem:[%s1612_s1 + $0x150] sm:$0xff]  }
  0x14   :  { %1087 = vmatprep.subr.bf16.mxu0 %v1239_v20  ;;  %v983_v55 = vcombine.high %v25_v54, %v25_v54  ;;  %v982_v57 = vcombine.low %v25_v54, %v25_v54  ;;  %v1278_v58 = vld [vmem:[%s1612_s1 + $0x198] sm:$0xff]   ;;  %v1280_v60 = vld [vmem:[%s1612_s1 + $0x110] sm:$0xff]   ;;  %v1284_v1 = vld [vmem:[%s1612_s1 + $0x148] sm:$0xff]  }
  0x15   :  { %1114 = vmatpush3.bf16.msra.mxu1 %v1238_v19  ;;  %v1281_v61 = vld [vmem:[%s1612_s1 + $0x1d0] sm:$0xff]   ;;  %v1286_v3 = vld [vmem:[%s1612_s1 + $0x108] sm:$0xff]   ;;  %v1289_v6 = vld [vmem:[%s1612_s1 + $0x140] sm:$0xff]  }
  0x16   :  { %1115 = vmatprep.subr.bf16.mxu1 %v1241_v22  ;;  %v1282_v62 = vld [vmem:[%s1612_s1 + $0x190] sm:$0xff]   ;;  %v1287_v4 = vld [vmem:[%s1612_s1 + $0x1c8] sm:$0xff]   ;;  %v1290_v7 = vld [vmem:[%s1612_s1 + $0x100] sm:$0xff]  }
  0x17   :  { %1088 = vmatpush3.bf16.msra.mxu0 %v1240_v21  ;;  %v26_v63 = vld [vmem:[%s1613_s0 + $0x50] sm:$0xff]  ;;  %v1288_v5 = vld [vmem:[%s1612_s1 + $0x188] sm:$0xff]   ;;  %v1291_v8 = vld [vmem:[%s1612_s1 + $0x1c0] sm:$0xff]  }
  0x18   :  { %1089 = vmatprep.subr.bf16.mxu0 %v1243_v24  ;;  %v985_v0 = vcombine.high %v26_v63, %v26_v63  ;;  %v984_v2 = vcombine.low %v26_v63, %v26_v63  ;;  %v1292_v9 = vld [vmem:[%s1613_s0 + $0x10] ss:$36 sps:$4 sm:$0xff]   ;;  %v1295_v11 = vld [vmem:[%s1612_s1 + $0x180] sm:$0xff]   ;;  %v1296_v12 = vld [vmem:[%s1612_s1 + $0x238] sm:$0xff]  }
  0x19   :  { %1116 = vmatpush3.bf16.msra.mxu1 %v1242_v23  ;;  %v1294_v10 = vld [vmem:[%s1613_s0 + $0x14] ss:$36 sps:$4 sm:$0xff]   ;;  %v1299_v14 = vld [vmem:[%s1613_s0 + $0x1c] ss:$36 sps:$4 sm:$0xff]   ;;  %v1303_v18 = vld [vmem:[%s1612_s1 + $0x228] sm:$0xff]  }
  0x1a   :  { %1117 = vmatprep.subr.bf16.mxu1 %v1245_v26  ;;  %v1297_v13 = vld [vmem:[%s1613_s0 + $0x18] ss:$36 sps:$4 sm:$0xff]   ;;  %v1300_v15 = vld [vmem:[%s1612_s1 + $0x230] sm:$0xff]   ;;  %v28_v19 = vld [vmem:[%s1613_s0 + $0x60] sm:$0xff] }
  0x1b   :  { %1090 = vmatpush3.bf16.msra.mxu0 %v1244_v25  ;;  %v27_v16 = vld [vmem:[%s1613_s0 + $0x58] sm:$0xff]  ;;  %v989_v21 = vcombine.high %v28_v19, %v28_v19  ;;  %v988_v22 = vcombine.low %v28_v19, %v28_v19  ;;  %v1306_v23 = vld [vmem:[%s1612_s1 + $0x220] sm:$0xff]   ;;  %v1308_v26 = vld [vmem:[%s1612_s1 + $0x210] sm:$0xff]  }
  0x1c   :  { %1091 = vmatprep.subr.bf16.mxu0 %v1247_v28  ;;  %v987_v17 = vcombine.high %v27_v16, %v27_v16  ;;  %v986_v20 = vcombine.low %v27_v16, %v27_v16  ;;  %v1311_v24 = vld [vmem:[%s1613_s0 + $0x20] ss:$36 sps:$4 sm:$0xff]   ;;  %v1307_v25 = vld [vmem:[%s1612_s1 + $0x218] sm:$0xff]  }
  0x1d   :  { %1118 = vmatpush3.bf16.msra.mxu1 %v1246_v27  ;;  %v1309_v27 = vld [vmem:[%s1612_s1 + $0x208] sm:$0xff]   ;;  %v1310_v28 = vld [vmem:[%s1612_s1 + $0x200] sm:$0xff]  }
  0x1e   :  { %1119 = vmatprep.subr.bf16.mxu1 %v1249_v30 }
  0x1f   :  { %1092 = vmatpush3.bf16.msra.mxu0 %v1248_v29  ;;  %v1312_v29 = vld [vmem:[%s1613_s0 + $0x68] ss:$0 sps:$4 sm:$0xff]  }
  0x20   :  { %1133 = vmatprep.subr.bf16.mxu0 %v1254_v34 }
  0x21   :  { %1120 = vmatpush3.bf16.msra.mxu1 %v1253_v33 }
  0x22   :  { %724 = vmatmul.mubr.bf16.vlgmr.msra.gmra.mxu0 %v1250_v31  ;;  %1161 = vmatprep.subr.bf16.mxu1 %v1259_v38 }
  0x23   :  { %1134 = vmatpush3.bf16.msra.mxu0 %v1258_v37  ;;  %731 = vmatprep.mubr.bf16.mxu0 %v983_v55 }
  0x24   :  { %772 = vmatmul.mubr.bf16.vlgmr.msra.gmra.mxu1 %v1255_v35  ;;  %1135 = vmatprep.subr.bf16.mxu0 %v1261_v40 }
  0x25   :  { %1162 = vmatpush3.bf16.msra.mxu1 %v1260_v39  ;;  %779 = vmatprep.mubr.bf16.mxu1 %v985_v0  ;;  %v972_v0 = vld [vmem:[%s1614_s2] ss:$0 sm:$0xff] }
  0x26   :  { %1163 = vmatprep.subr.bf16.mxu1 %v1263_v42 }
  0x27   :  { %1136 = vmatpush3.bf16.msra.mxu0 %v1262_v41 }
  0x28   :  { %1137 = vmatprep.subr.bf16.mxu0 %v1265_v44 }
  0x29   :  { %1164 = vmatpush3.bf16.msra.mxu1 %v1264_v43 }
  0x2a   :  { %1165 = vmatprep.subr.bf16.mxu1 %v1267_v46  ;;  %732 = vmatmul.mubr.bf16.gmra.mxu0 %v982_v57 }
  0x2b   :  { %1138 = vmatpush3.bf16.msra.mxu0 %v1266_v45  ;;  %819 = vmatprep.mubr.bf16.mxu0 %v1294_v10 }
  0x2c   :  { %1139 = vmatprep.subr.bf16.mxu0 %v1269_v48  ;;  %780 = vmatmul.mubr.bf16.gmra.mxu1 %v984_v2 }
  0x2d   :  { %1166 = vmatpush3.bf16.msra.mxu1 %v1268_v47  ;;  %867 = vmatprep.mubr.bf16.mxu1 %v1299_v14 }
  0x2e   :  { %1167 = vmatprep.subr.bf16.mxu1 %v1271_v50 }
  0x2f   :  { %1140 = vmatpush3.bf16.msra.mxu0 %v1270_v49 }
  0x30   :  { %1141 = vmatprep.subr.bf16.mxu0 %v1273_v52 }
  0x31   :  { %1168 = vmatpush3.bf16.msra.mxu1 %v1272_v51 }
  0x32   :  { %1169 = vmatprep.subr.bf16.mxu1 %v1276_v56 }
  0x33   :  { %1142 = vmatpush3.bf16.msra.mxu0 %v1274_v53 }
  0x34   :  { %1143 = vmatprep.subr.bf16.mxu0 %v1279_v59 }
  0x35   :  { %1170 = vmatpush3.bf16.msra.mxu1 %v1278_v58 }
  0x36   :  { %1171 = vmatprep.subr.bf16.mxu1 %v1281_v61 }
  0x37   :  { %1144 = vmatpush3.bf16.msra.mxu0 %v1280_v60 }
  0x38   :  { %1145 = vmatprep.subr.bf16.mxu0 %v1284_v1 }
  0x39   :  { %1172 = vmatpush3.bf16.msra.mxu1 %v1282_v62 }
  0x3a   :  { %1173 = vmatprep.subr.bf16.mxu1 %v1287_v4 }
  0x3b   :  { %1146 = vmatpush3.bf16.msra.mxu0 %v1286_v3 }
  0x3c   :  { %1147 = vmatprep.subr.bf16.mxu0 %v1289_v6 }
  0x3d   :  { %1174 = vmatpush3.bf16.msra.mxu1 %v1288_v5 }
  0x3e   :  { %1175 = vmatprep.subr.bf16.mxu1 %v1291_v8 }
  0x3f   :  { %1148 = vmatpush3.bf16.msra.mxu0 %v1290_v7 }
  0x40   :  { %1199 = vmatprep.subr.bf16.mxu0 %v1296_v12 }
  0x41   :  { %1176 = vmatpush3.bf16.msra.mxu1 %v1295_v11 }
  0x42   :  { %820 = vmatmul.mubr.bf16.vlgmr.msra.gmra.mxu0 %v1292_v9 }
  0x43   :  { %1200 = vmatpush3.bf16.msra.mxu0 %v1296_v12  ;;  %827 = vmatprep.mubr.bf16.mxu0 %v987_v17 }
  0x44   :  { %868 = vmatmul.mubr.bf16.vlgmr.msra.gmra.mxu1 %v1297_v13  ;;  %1201 = vmatprep.subr.bf16.mxu0 %v1300_v15 }
  0x45   :  { %875 = vmatprep.mubr.bf16.mxu1 %v989_v21 }
  0x47   :  { %1202 = vmatpush3.bf16.msra.mxu0 %v1300_v15 }
  0x48   :  { %1203 = vmatprep.subr.bf16.mxu0 %v1303_v18 }
  0x4a   :  { %828 = vmatmul.mubr.bf16.gmra.mxu0 %v986_v20 }
  0x4b   :  { %1204 = vmatpush3.bf16.msra.mxu0 %v1303_v18  ;;  %1215 = vmatprep.mubr.bf16.mxu0 %v1311_v24 }
  0x4c   :  { %876 = vmatmul.mubr.bf16.gmra.mxu1 %v988_v22  ;;  %1205 = vmatprep.subr.bf16.mxu0 %v1306_v23 }
  0x4f   :  { %1206 = vmatpush3.bf16.msra.mxu0 %v1306_v23 }
  0x50   :  { %1207 = vmatprep.subr.bf16.mxu0 %v1307_v25 }
  0x53   :  { %1208 = vmatpush3.bf16.msra.mxu0 %v1307_v25 }
  0x54   :  { %1209 = vmatprep.subr.bf16.mxu0 %v1308_v26 }
  0x57   :  { %1210 = vmatpush3.bf16.msra.mxu0 %v1308_v26 }
  0x58   :  { %1211 = vmatprep.subr.bf16.mxu0 %v1309_v27 }
  0x5b   :  { %1212 = vmatpush3.bf16.msra.mxu0 %v1309_v27 }
  0x5c   :  { %1213 = vmatprep.subr.bf16.mxu0 %v1310_v28 }
  0x5f   :  { %1214 = vmatpush3.bf16.msra.mxu0 %v1310_v28 }
  0x62   :  { %1216 = vmatmul.mubr.bf16.vlgmr.msra.gmra.mxu0 %v1312_v29 }
  0xe2   :  { %v1093_v30 = vpop.f32.mrf.mxu0 }
  0xe4   :  { %v1094_v31 = vpop.f32.mrf.mxu0  ;;  %v1121_v32 = vpop.f32.mrf.mxu1 }
  0xe5   :  { %v1095_v63 = vadd.f32 %v1094_v31, %v1093_v30 }
  0xe6   :  { %v1096_v33 = vpop.f32.mrf.mxu0  ;;  %v1122_v34 = vpop.f32.mrf.mxu1 }
  0xe7   :  { %v726_v3 = vadd.f32 %v1095_v63, %v972_v0  ;;  %v1123_v4 = vadd.f32 %v1122_v34, %v1121_v32 }
  0xe8   :  { %v1097_v35 = vpop.f32.mrf.mxu0  ;;  %v1124_v37 = vpop.f32.mrf.mxu1 }
  0xe9   :  { %v1098_v5 = vadd.f32 %v1097_v35, %v1096_v33  ;;  %v774_v9 = vadd.f32 %v1123_v4, %v726_v3 }
  0xea   :  { %v1099_v36 = vpop.f32.mrf.mxu0  ;;  %v1125_v40 = vpop.f32.mrf.mxu1 }
  0xeb   :  { %v729_v10 = vadd.f32 %v1098_v5, %v972_v0  ;;  %v1126_v11 = vadd.f32 %v1125_v40, %v1124_v37 }
  0xec   :  { %v1100_v38 = vpop.f32.mrf.mxu0  ;;  %v1127_v42 = vpop.f32.mrf.mxu1 }
  0xed   :  { %v1101_v62 = vadd.f32 %v1100_v38, %v1099_v36  ;;  %v777_v17 = vadd.f32 %v1126_v11, %v729_v10 }
  0xee   :  { %v1102_v39 = vpop.f32.mrf.mxu0  ;;  %v1128_v43 = vpop.f32.mrf.mxu1 }
  0xef   :  { %v734_v1 = vadd.f32 %v1101_v62, %v972_v0  ;;  %v1129_v2 = vadd.f32 %v1128_v43, %v1127_v42 }
  0xf0   :  { %v1103_v41 = vpop.f32.mrf.mxu0  ;;  %v1130_v44 = vpop.f32.mrf.mxu1 }
  0xf1   :  { %v782_v7 = vadd.f32 %v1129_v2, %v734_v1 }
  0xf2   :  { %v1131_v45 = vpop.f32.mrf.mxu1 }
 0x102   :  { %v1149_v46 = vpop.f32.mrf.mxu0 }
 0x104   :  { %v1150_v47 = vpop.f32.mrf.mxu0  ;;  %v1177_v48 = vpop.f32.mrf.mxu1 }
 0x105   :  { %v1151_v8 = vadd.f32 %v1150_v47, %v1149_v46 }
 0x106   :  { %v1152_v49 = vpop.f32.mrf.mxu0  ;;  %v1178_v50 = vpop.f32.mrf.mxu1 }
 0x107   :  { %v822_v14 = vadd.f32 %v1151_v8, %v774_v9  ;;  %v1179_v15 = vadd.f32 %v1178_v50, %v1177_v48 }
 0x108   :  { %v1153_v51 = vpop.f32.mrf.mxu0  ;;  %v1180_v52 = vpop.f32.mrf.mxu1 }
 0x109   :  { %v1154_v16 = vadd.f32 %v1153_v51, %v1152_v49  ;;  %v870_v23 = vadd.f32 %v1179_v15, %v822_v14 }
 0x10a   :  { %v1155_v53 = vpop.f32.mrf.mxu0  ;;  %v1181_v54 = vpop.f32.mrf.mxu1 }
 0x10b   :  { %v825_v20 = vadd.f32 %v1154_v16, %v777_v17  ;;  %v1182_v21 = vadd.f32 %v1181_v54, %v1180_v52 }
 0x10c   :  { %v1156_v55 = vpop.f32.mrf.mxu0  ;;  %v1183_v56 = vpop.f32.mrf.mxu1 }
 0x10d   :  { %v1157_v6 = vadd.f32 %v1156_v55, %v1155_v53  ;;  %v873_v29 = vadd.f32 %v1182_v21, %v825_v20 }
 0x10e   :  { %v1158_v57 = vpop.f32.mrf.mxu0  ;;  %v1184_v58 = vpop.f32.mrf.mxu1 }
 0x10f   :  { %v830_v12 = vadd.f32 %v1157_v6, %v782_v7  ;;  %v1185_v13 = vadd.f32 %v1184_v58, %v1183_v56 }
 0x110   :  { %v1159_v59 = vpop.f32.mrf.mxu0  ;;  %v1186_v60 = vpop.f32.mrf.mxu1 }
 0x111   :  { %v878_v18 = vadd.f32 %v1185_v13, %v830_v12 }
 0x112   :  { %v1187_v61 = vpop.f32.mrf.mxu1 }
 0x122   :  { %v1217_v19 = vpop.f32.mrf.mxu0 }
 0x123   :  { %v926_v22 = vadd.f32 %v1217_v19, %v878_v18 }
 0x124   :  { %v917_v24 = vpop.f32.mrf.mxu0 }
 0x125   :  { %v1065_v25 = vmul.f32 -1.442695, %v926_v22  ;;  %v918_v26 = vadd.f32 %v917_v24, %v870_v23 }
 0x126   :  { %v1218_v27 = vpop.f32.mrf.mxu0 }
 0x127   :  { %1313 = vpow2.f32 %v1065_v25  ;;  %v1063_v28 = vmul.f32 -1.442695, %v918_v26 }
 0x128   :  { %v920_v30 = vpop.f32.mrf.mxu0 }
 0x129   :  { %1315 = vpow2.f32 %v1063_v28  ;;  %v921_v31 = vadd.f32 %v920_v30, %v873_v29 }
 0x12b   :  { %v1064_v32 = vmul.f32 -1.442695, %v921_v31 }
 0x12d   :  { %1317 = vpow2.f32 %v1064_v32 }
 0x134   :  { %v1314_v33 = vpop.eup %1313 }
 0x135   :  { %v942_v34 = vadd.f32 1.0, %v1314_v33 }
 0x136   :  { %v1316_v35 = vpop.eup %1315 }
 0x137   :  { %1319 = vrcp.f32 %v942_v34  ;;  %v940_v36 = vadd.f32 1.0, %v1316_v35 }
 0x139   :  { %1321 = vrcp.f32 %v940_v36 }
 0x13a   :  { %v1318_v37 = vpop.eup %1317 }
 0x13b   :  { %v941_v38 = vadd.f32 1.0, %v1318_v37 }
 0x13d   :  { %1323 = vrcp.f32 %v941_v38 }
 0x144   :  { %v1320_v39 = vpop.eup %1319 }
 0x145   :  { %v951_v40 = vmul.f32 %v1320_v39, %v926_v22 }
 0x146   :  { %v1322_v42 = vpop.eup %1321 }
 0x147   :  { %v1071_v41 = vpack.c.bf16 %v951_v40, %v951_v40  ;;  %v949_v44 = vmul.f32 %v1322_v42, %v918_v26 }
 0x149   :  { %967 = vst [vmem:[%s1615_s3 + $0x8] sm:$0xf] %v1071_v41 }
 0x14a   :  { %v1324_v43 = vpop.eup %1323 }
 0x14b   :  { %v950_v45 = vmul.f32 %v1324_v43, %v921_v31 }
 0x14d   :  { %v1075_v46 = vpack.c.bf16 %v950_v45, %v949_v44 }
 0x14f   :  { %1076 = vst [vmem:[%s1615_s3] sm:$0xff] %v1075_v46  }

// kernel: shallow_cnn_forward.9
= control target key start
LH: loop header
LB: loop body
LE: loop exit
PB: predicated region body
PF: predicated region fallthrough
CT: control target
= control target key end

     0   :  { %vm1391_vm0 = vmmov 0   ;;  %vm852_vm1 = vcmask 64512   ;;  %vm1019_vm2 = vcmask 1041408   ;;  %vm1032_vm3 = vcmask 1024   ;;  %s1749_s1 = inlined_call_operand.vmem [shape: bf16[1152,128], index: 1, kind: input, shape index: {}]   ;;  %s1750_s0 = inlined_call_operand.vmem [shape: bf16[8,1152], index: 0, kind: input, shape index: {}]   ;;  %s1751_s2 = inlined_call_operand.vmem [shape: f32[1,128], index: 2, kind: input, shape index: {}]   ;;  %s1752_s3 = inlined_call_operand.vmem [shape: f32[2,8], index: 3, kind: input, shape index: {}]   ;;  %s1753_s4 = inlined_call_operand.vmem [shape: f32[128,128], index: 4, kind: input, shape index: {}]   ;;  %s1754_s5 = inlined_call_operand.vmem [shape: f32[1,128], index: 5, kind: input, shape index: {}]   ;;  %s1755_s6 = inlined_call_operand.vmem [shape: f32[2,1], index: 6, kind: output, shape index: {}]  }
   0x1   :  { %v1301_v0 = vld [vmem:[%s1749_s1 + $0x78] sm:$0xff]   ;;  %v1305_v4 = vld [vmem:[%s1749_s1 + $0x70] sm:$0xff]   ;;  %v1309_v8 = vld [vmem:[%s1749_s1 + $0x68] sm:$0xff]  }
   0x2   :  { %v1302_v1 = vld [vmem:[%s1749_s1 + $0x38] sm:$0xff]   ;;  %1123 = vmatprep.subr.bf16.mxu0 %v1301_v0  ;;  %v1306_v5 = vld [vmem:[%s1749_s1 + $0x30] sm:$0xff]   ;;  %v1310_v9 = vld [vmem:[%s1749_s1 + $0x28] sm:$0xff]  }
   0x3   :  { %v1303_v2 = vld [vmem:[%s1749_s1 + $0xf8] sm:$0xff]   ;;  %1124 = vmatpush3.bf16.msra.mxu0 %v1302_v1  ;;  %v1307_v6 = vld [vmem:[%s1749_s1 + $0xf0] sm:$0xff]   ;;  %v1311_v10 = vld [vmem:[%s1749_s1 + $0xe8] sm:$0xff]  }
   0x4   :  { %v1304_v3 = vld [vmem:[%s1749_s1 + $0xb8] sm:$0xff]   ;;  %1145 = vmatprep.subr.bf16.mxu1 %v1303_v2  ;;  %1125 = vmatprep.subr.bf16.mxu0 %v1305_v4  ;;  %v1308_v7 = vld [vmem:[%s1749_s1 + $0xb0] sm:$0xff]   ;;  %v1312_v11 = vld [vmem:[%s1749_s1 + $0xa8] sm:$0xff]  }
   0x5   :  { %1146 = vmatpush3.bf16.msra.mxu1 %v1304_v3  ;;  %v1313_v12 = vld [vmem:[%s1749_s1 + $0x60] sm:$0xff]   ;;  %v1317_v16 = vld [vmem:[%s1749_s1 + $0x58] sm:$0xff]   ;;  %v1321_v20 = vld [vmem:[%s1749_s1 + $0x50] sm:$0xff]  }
   0x6   :  { %1147 = vmatprep.subr.bf16.mxu1 %v1307_v6  ;;  %v1314_v13 = vld [vmem:[%s1749_s1 + $0x20] sm:$0xff]   ;;  %v1318_v17 = vld [vmem:[%s1749_s1 + $0x18] sm:$0xff]   ;;  %v1322_v21 = vld [vmem:[%s1749_s1 + $0x10] sm:$0xff]  }
   0x7   :  { %1126 = vmatpush3.bf16.msra.mxu0 %v1306_v5  ;;  %v1315_v14 = vld [vmem:[%s1749_s1 + $0xe0] sm:$0xff]   ;;  %v1319_v18 = vld [vmem:[%s1749_s1 + $0xd8] sm:$0xff]   ;;  %v1323_v22 = vld [vmem:[%s1749_s1 + $0xd0] sm:$0xff]  }
   0x8   :  { %1127 = vmatprep.subr.bf16.mxu0 %v1309_v8  ;;  %v1316_v15 = vld [vmem:[%s1749_s1 + $0xa0] sm:$0xff]   ;;  %v1320_v19 = vld [vmem:[%s1749_s1 + $0x98] sm:$0xff]   ;;  %v1324_v23 = vld [vmem:[%s1749_s1 + $0x90] sm:$0xff]  }
   0x9   :  { %1148 = vmatpush3.bf16.msra.mxu1 %v1308_v7  ;;  %v1325_v24 = vld [vmem:[%s1749_s1 + $0x48] sm:$0xff]   ;;  %v1329_v28 = vld [vmem:[%s1749_s1 + $0x40] sm:$0xff]   ;;  %v1335_v35 = vld [vmem:[%s1749_s1 + $0x178] sm:$0xff]  }
   0xa   :  { %1149 = vmatprep.subr.bf16.mxu1 %v1311_v10  ;;  %v1326_v25 = vld [vmem:[%s1749_s1 + $0x8] sm:$0xff]   ;;  %v1330_v29 = vld [vmem:[%s1749_s1] sm:$0xff]   ;;  %v1338_v39 = vld [vmem:[%s1749_s1 + $0x138] sm:$0xff]  }
   0xb   :  { %1128 = vmatpush3.bf16.msra.mxu0 %v1310_v9  ;;  %v1327_v26 = vld [vmem:[%s1749_s1 + $0xc8] sm:$0xff]   ;;  %v1331_v30 = vld [vmem:[%s1749_s1 + $0xc0] sm:$0xff]   ;;  %v1339_v40 = vld [vmem:[%s1749_s1 + $0x1f8] sm:$0xff]   ;;  %v1390_v9 = vmov 0.0  }
   0xc   :  { %1129 = vmatprep.subr.bf16.mxu0 %v1313_v12  ;;  %v1328_v27 = vld [vmem:[%s1749_s1 + $0x88] sm:$0xff]   ;;  %v24_v31 = vld [vmem:[%s1750_s0] sm:$0xff]  ;;  %v1340_v41 = vld [vmem:[%s1749_s1 + $0x1b8] sm:$0xff]  }
   0xd   :  { %1150 = vmatpush3.bf16.msra.mxu1 %v1312_v11  ;;  %v1039_v32 = vcombine.low %v24_v31, %v24_v31  ;;  %v1040_v33 = vcombine.high %v24_v31, %v24_v31  ;;  %v1334_v34 = vld [vmem:[%s1749_s1 + $0x80] sm:$0xff]   ;;  %v25_v36 = vld [vmem:[%s1750_s0 + $0x8] sm:$0xff]  ;;  %v1341_v42 = vld [vmem:[%s1749_s1 + $0x170] sm:$0xff]  }
   0xe   :  { %1151 = vmatprep.subr.bf16.mxu1 %v1315_v14  ;;  %v1041_v37 = vcombine.low %v25_v36, %v25_v36  ;;  %v1042_v38 = vcombine.high %v25_v36, %v25_v36  ;;  %v1342_v43 = vld [vmem:[%s1749_s1 + $0x130] sm:$0xff]   ;;  %v1345_v46 = vld [vmem:[%s1749_s1 + $0x168] sm:$0xff]   ;;  %v1349_v50 = vld [vmem:[%s1749_s1 + $0x160] sm:$0xff]  }
   0xf   :  { %1130 = vmatpush3.bf16.msra.mxu0 %v1314_v13  ;;  %676 = vmatprep.mubr.bf16.mxu0 %v1040_v33  ;;  %v1343_v44 = vld [vmem:[%s1749_s1 + $0x1f0] sm:$0xff]   ;;  %v1346_v47 = vld [vmem:[%s1749_s1 + $0x128] sm:$0xff]   ;;  %v1350_v51 = vld [vmem:[%s1749_s1 + $0x120] sm:$0xff]  }
  0x10   :  { %1131 = vmatprep.subr.bf16.mxu0 %v1317_v16  ;;  %716 = vmatprep.mubr.bf16.mxu1 %v1042_v38  ;;  %v1344_v45 = vld [vmem:[%s1749_s1 + $0x1b0] sm:$0xff]   ;;  %v1347_v48 = vld [vmem:[%s1749_s1 + $0x1e8] sm:$0xff]   ;;  %v1351_v52 = vld [vmem:[%s1749_s1 + $0x1e0] sm:$0xff]  }
  0x11   :  { %1152 = vmatpush3.bf16.msra.mxu1 %v1316_v15  ;;  %v1348_v49 = vld [vmem:[%s1749_s1 + $0x1a8] sm:$0xff]   ;;  %v1352_v53 = vld [vmem:[%s1749_s1 + $0x1a0] sm:$0xff]   ;;  %v1353_v54 = vld [vmem:[%s1749_s1 + $0x158] sm:$0xff]  }
  0x12   :  { %1153 = vmatprep.subr.bf16.mxu1 %v1319_v18  ;;  %v1354_v55 = vld [vmem:[%s1749_s1 + $0x118] sm:$0xff]   ;;  %v1357_v58 = vld [vmem:[%s1749_s1 + $0x150] sm:$0xff]   ;;  %v1361_v62 = vld [vmem:[%s1749_s1 + $0x148] sm:$0xff]  }
  0x13   :  { %1132 = vmatpush3.bf16.msra.mxu0 %v1318_v17  ;;  %v1355_v56 = vld [vmem:[%s1749_s1 + $0x1d8] sm:$0xff]   ;;  %v1358_v59 = vld [vmem:[%s1749_s1 + $0x110] sm:$0xff]   ;;  %v1362_v63 = vld [vmem:[%s1749_s1 + $0x108] sm:$0xff]  }
  0x14   :  { %1133 = vmatprep.subr.bf16.mxu0 %v1321_v20  ;;  %v1356_v57 = vld [vmem:[%s1749_s1 + $0x198] sm:$0xff]   ;;  %v1359_v60 = vld [vmem:[%s1749_s1 + $0x1d0] sm:$0xff]   ;;  %v1363_v0 = vld [vmem:[%s1749_s1 + $0x1c8] sm:$0xff]  }
  0x15   :  { %1154 = vmatpush3.bf16.msra.mxu1 %v1320_v19  ;;  %v1360_v61 = vld [vmem:[%s1749_s1 + $0x190] sm:$0xff]   ;;  %v1364_v1 = vld [vmem:[%s1749_s1 + $0x188] sm:$0xff]   ;;  %v1365_v2 = vld [vmem:[%s1749_s1 + $0x140] sm:$0xff]  }
  0x16   :  { %1155 = vmatprep.subr.bf16.mxu1 %v1323_v22  ;;  %v1366_v3 = vld [vmem:[%s1749_s1 + $0x100] sm:$0xff]   ;;  %v26_v5 = vld [vmem:[%s1750_s0 + $0x10] sm:$0xff]  ;;  %v27_v10 = vld [vmem:[%s1750_s0 + $0x18] sm:$0xff] }
  0x17   :  { %1134 = vmatpush3.bf16.msra.mxu0 %v1322_v21  ;;  %v1367_v4 = vld [vmem:[%s1749_s1 + $0x1c0] sm:$0xff]   ;;  %v1043_v6 = vcombine.low %v26_v5, %v26_v5  ;;  %v1044_v7 = vcombine.high %v26_v5, %v26_v5  ;;  %v1045_v11 = vcombine.low %v27_v10, %v27_v10  ;;  %v1046_v12 = vcombine.high %v27_v10, %v27_v10  ;;  %v1373_v13 = vld [vmem:[%s1749_s1 + $0x238] sm:$0xff]   ;;  %v1374_v14 = vld [vmem:[%s1749_s1 + $0x230] sm:$0xff]  }
  0x18   :  { %1135 = vmatprep.subr.bf16.mxu0 %v1325_v24  ;;  %v1370_v8 = vld [vmem:[%s1749_s1 + $0x180] sm:$0xff]   ;;  %v1375_v15 = vld [vmem:[%s1749_s1 + $0x228] sm:$0xff]   ;;  %v1377_v17 = vld [vmem:[%s1749_s1 + $0x218] sm:$0xff]  }
  0x19   :  { %1156 = vmatpush3.bf16.msra.mxu1 %v1324_v23  ;;  %v1376_v16 = vld [vmem:[%s1749_s1 + $0x220] sm:$0xff]   ;;  %v1378_v18 = vld [vmem:[%s1749_s1 + $0x210] sm:$0xff]   ;;  %v1379_v19 = vld [vmem:[%s1749_s1 + $0x208] sm:$0xff]  }
  0x1a   :  { %1157 = vmatprep.subr.bf16.mxu1 %v1327_v26  ;;  %v1380_v20 = vld [vmem:[%s1749_s1 + $0x200] sm:$0xff]  }
  0x1b   :  { %1136 = vmatpush3.bf16.msra.mxu0 %v1326_v25  ;;  %v1381_v21 = vld [vmem:[%s1750_s0 + $0x20] ss:$0 sps:$4 sm:$0xff]  }
  0x1c   :  { %1137 = vmatprep.subr.bf16.mxu0 %v1329_v28  ;;  %v930_v5 = vld [vmem:[%s1753_s4 + $0x20] sm:$0xff] }
  0x1d   :  { %1158 = vmatpush3.bf16.msra.mxu1 %v1328_v27  ;;  %v926_v10 = vld [vmem:[%s1753_s4] sm:$0xff] }
  0x1e   :  { %1159 = vmatprep.subr.bf16.mxu1 %v1331_v30 }
  0x1f   :  { %1138 = vmatpush3.bf16.msra.mxu0 %v1330_v29 }
  0x20   :  { %1167 = vmatprep.subr.bf16.mxu0 %v1335_v35 }
  0x21   :  { %1160 = vmatpush3.bf16.msra.mxu1 %v1334_v34 }
  0x22   :  { %677 = vmatmul.mubr.bf16.vlgmr.msra.gmra.mxu0 %v1039_v32  ;;  %1189 = vmatprep.subr.bf16.mxu1 %v1339_v40 }
  0x23   :  { %1168 = vmatpush3.bf16.msra.mxu0 %v1338_v39  ;;  %756 = vmatprep.mubr.bf16.mxu0 %v1044_v7  ;;  %v1038_v39 = vld [vmem:[%s1751_s2] ss:$0 sm:$0xff]  ;;  %v928_v7 = vld [vmem:[%s1753_s4 + $0x10] sm:$0xff] }
  0x24   :  { %717 = vmatmul.mubr.bf16.vlgmr.msra.gmra.mxu1 %v1041_v37  ;;  %1169 = vmatprep.subr.bf16.mxu0 %v1341_v42 }
  0x25   :  { %1190 = vmatpush3.bf16.msra.mxu1 %v1340_v41  ;;  %796 = vmatprep.mubr.bf16.mxu1 %v1046_v12 }
  0x26   :  { %1191 = vmatprep.subr.bf16.mxu1 %v1343_v44 }
  0x27   :  { %1170 = vmatpush3.bf16.msra.mxu0 %v1342_v43 }
  0x28   :  { %1171 = vmatprep.subr.bf16.mxu0 %v1345_v46 }
  0x29   :  { %1192 = vmatpush3.bf16.msra.mxu1 %v1344_v45 }
  0x2a   :  { %1193 = vmatprep.subr.bf16.mxu1 %v1347_v48 }
  0x2b   :  { %1172 = vmatpush3.bf16.msra.mxu0 %v1346_v47 }
  0x2c   :  { %1173 = vmatprep.subr.bf16.mxu0 %v1349_v50 }
  0x2d   :  { %1194 = vmatpush3.bf16.msra.mxu1 %v1348_v49 }
  0x2e   :  { %1195 = vmatprep.subr.bf16.mxu1 %v1351_v52 }
  0x2f   :  { %1174 = vmatpush3.bf16.msra.mxu0 %v1350_v51 }
  0x30   :  { %1175 = vmatprep.subr.bf16.mxu0 %v1353_v54 }
  0x31   :  { %1196 = vmatpush3.bf16.msra.mxu1 %v1352_v53 }
  0x32   :  { %1197 = vmatprep.subr.bf16.mxu1 %v1355_v56 }
  0x33   :  { %1176 = vmatpush3.bf16.msra.mxu0 %v1354_v55 }
  0x34   :  { %1177 = vmatprep.subr.bf16.mxu0 %v1357_v58  ;;  %v941_v58 = vld [vmem:[%s1753_s4 + $0x78] sm:$0xff] }
  0x35   :  { %1198 = vmatpush3.bf16.msra.mxu1 %v1356_v57  ;;  %v851_v57 = vld [vmem:[%s1752_s3] sm:$0x3] }
  0x36   :  { %1199 = vmatprep.subr.bf16.mxu1 %v1359_v60  ;;  %v939_v60 = vld [vmem:[%s1753_s4 + $0x68] sm:$0xff] }
  0x37   :  { %1178 = vmatpush3.bf16.msra.mxu0 %v1358_v59  ;;  %v940_v59 = vld [vmem:[%s1753_s4 + $0x70] sm:$0xff] }
  0x38   :  { %1179 = vmatprep.subr.bf16.mxu0 %v1361_v62  ;;  %v937_v62 = vld [vmem:[%s1753_s4 + $0x58] sm:$0xff] }
  0x39   :  { %1200 = vmatpush3.bf16.msra.mxu1 %v1360_v61  ;;  %v938_v61 = vld [vmem:[%s1753_s4 + $0x60] sm:$0xff] }
  0x3a   :  { %1201 = vmatprep.subr.bf16.mxu1 %v1363_v0  ;;  %v935_v0 = vld [vmem:[%s1753_s4 + $0x48] sm:$0xff] }
  0x3b   :  { %1180 = vmatpush3.bf16.msra.mxu0 %v1362_v63  ;;  %v936_v63 = vld [vmem:[%s1753_s4 + $0x50] sm:$0xff] }
  0x3c   :  { %1181 = vmatprep.subr.bf16.mxu0 %v1365_v2  ;;  %v933_v2 = vld [vmem:[%s1753_s4 + $0x38] sm:$0xff] }
  0x3d   :  { %1202 = vmatpush3.bf16.msra.mxu1 %v1364_v1  ;;  %v934_v1 = vld [vmem:[%s1753_s4 + $0x40] sm:$0xff] }
  0x3e   :  { %1203 = vmatprep.subr.bf16.mxu1 %v1367_v4  ;;  %v931_v4 = vld [vmem:[%s1753_s4 + $0x28] sm:$0xff] }
  0x3f   :  { %1182 = vmatpush3.bf16.msra.mxu0 %v1366_v3  ;;  %v932_v3 = vld [vmem:[%s1753_s4 + $0x30] sm:$0xff] }
  0x40   :  { %1239 = vmatprep.subr.bf16.mxu0 %v1390_v9 }
  0x41   :  { %1204 = vmatpush3.bf16.msra.mxu1 %v1370_v8  ;;  %v927_v8 = vld [vmem:[%s1753_s4 + $0x8] sm:$0xff] }
  0x42   :  { %757 = vmatmul.mubr.bf16.vlgmr.msra.gmra.mxu0 %v1043_v6  ;;  %1259 = vmatprep.subr.mxu1 %v1390_v9  ;;  %v929_v6 = vld [vmem:[%s1753_s4 + $0x18] sm:$0xff] }
  0x43   :  { %1240 = vmatpush3.bf16.msra.mxu0 %v1373_v13  ;;  %1255 = vmatprep.mubr.msk.bf16.mxu0 %vm1391_vm0, %v1390_v9  ;;  %v1122_v13 = vld [vmem:[%s1754_s5] ss:$0 sm:$0xff] }
  0x44   :  { %797 = vmatmul.mubr.bf16.vlgmr.msra.gmra.mxu1 %v1045_v11  ;;  %1241 = vmatprep.subr.bf16.mxu0 %v1390_v9 }
  0x45   :  { %1261 = vmatprep.mubr.msk.f32.mxu1 %vm1391_vm0, %v1390_v9 }
  0x47   :  { %1242 = vmatpush3.bf16.msra.mxu0 %v1374_v14 }
  0x48   :  { %1243 = vmatprep.subr.bf16.mxu0 %v1390_v9 }
  0x4b   :  { %1244 = vmatpush3.bf16.msra.mxu0 %v1375_v15 }
  0x4c   :  { %1245 = vmatprep.subr.bf16.mxu0 %v1390_v9 }
  0x4f   :  { %1246 = vmatpush3.bf16.msra.mxu0 %v1376_v16 }
  0x50   :  { %1247 = vmatprep.subr.bf16.mxu0 %v1390_v9 }
  0x53   :  { %1248 = vmatpush3.bf16.msra.mxu0 %v1377_v17 }
  0x54   :  { %1249 = vmatprep.subr.bf16.mxu0 %v1390_v9 }
  0x57   :  { %1250 = vmatpush3.bf16.msra.mxu0 %v1378_v18 }
  0x58   :  { %1251 = vmatprep.subr.bf16.mxu0 %v1390_v9 }
  0x5b   :  { %1252 = vmatpush3.bf16.msra.mxu0 %v1379_v19 }
  0x5c   :  { %1253 = vmatprep.subr.bf16.mxu0 %v1390_v9 }
  0x5f   :  { %1254 = vmatpush3.bf16.msra.mxu0 %v1380_v20 }
  0x62   :  { %1256 = vmatmul.mubr.bf16.vlgmr.msra.gmra.mxu0 %v1381_v21 }
  0xe2   :  { %v1139_v22 = vpop.f32.mrf.mxu0 }
  0xe4   :  { %v1140_v23 = vpop.f32.mrf.mxu0  ;;  %v1161_v24 = vpop.f32.mrf.mxu1 }
  0xe5   :  { %v1141_v38 = vadd.f32 %v1140_v23, %v1139_v22 }
  0xe6   :  { %v1142_v25 = vpop.f32.mrf.mxu0  ;;  %v1162_v26 = vpop.f32.mrf.mxu1 }
  0xe7   :  { %v679_v40 = vadd.f32 %v1141_v38, %v1038_v39  ;;  %v1163_v41 = vadd.f32 %v1162_v26, %v1161_v24 }
  0xe8   :  { %v1143_v27 = vpop.f32.mrf.mxu0  ;;  %v1164_v28 = vpop.f32.mrf.mxu1 }
  0xe9   :  { %v719_v43 = vadd.f32 %v1163_v41, %v679_v40 }
  0xea   :  { %v1165_v29 = vpop.f32.mrf.mxu1 }
 0x102   :  { %v1183_v30 = vpop.f32.mrf.mxu0 }
 0x104   :  { %v1184_v31 = vpop.f32.mrf.mxu0  ;;  %v1205_v32 = vpop.f32.mrf.mxu1 }
 0x105   :  { %v1185_v42 = vadd.f32 %v1184_v31, %v1183_v30 }
 0x106   :  { %v1186_v33 = vpop.f32.mrf.mxu0  ;;  %v1206_v34 = vpop.f32.mrf.mxu1 }
 0x107   :  { %v759_v44 = vadd.f32 %v1185_v42, %v719_v43  ;;  %v1207_v45 = vadd.f32 %v1206_v34, %v1205_v32 }
 0x108   :  { %v1187_v35 = vpop.f32.mrf.mxu0  ;;  %v1208_v36 = vpop.f32.mrf.mxu1 }
 0x109   :  { %v799_v46 = vadd.f32 %v1207_v45, %v759_v44 }
 0x10a   :  { %v1209_v37 = vpop.f32.mrf.mxu1 }
 0x122   :  { %v838_v47 = vpop.f32.mrf.mxu0 }
 0x123   :  { %v839_v48 = vadd.f32 %v838_v47, %v799_v46 }
 0x124   :  { %v1257_v49 = vpop.f32.mrf.mxu0 }
 0x125   :  { %v1120_v50 = vmul.f32 -1.442695, %v839_v48 }
 0x126   :  { %v841_v51 = vpop.f32.mrf.mxu0 }
 0x127   :  { %1382 = vpow2.f32 %v1120_v50 }
 0x128   :  { %v1258_v52 = vpop.f32.mrf.mxu0 }
 0x134   :  { %v1383_v53 = vpop.eup %1382 }
 0x135   :  { %v847_v54 = vadd.f32 1.0, %v1383_v53 }
 0x137   :  { %1384 = vrcp.f32 %v847_v54 }
 0x144   :  { %v1385_v55 = vpop.eup %1384 }
 0x145   :  { %v850_v56 = vmul.f32 %v1385_v55, %v839_v48 }
 0x147   :  { %1260 = vmatpush3.msra.mxu1 %v850_v56 }
 0x148   :  { %1262 = vmatmul.mubr.msk.f32.vlgmr.msra.gmra.mxu1 %vm852_vm1, %v851_v57  ;;  %1264 = vmatprep.subr.mxu1 %v1390_v9 }
 0x149   :  { %1265 = vmatpush3.msra.mxu1 %v941_v58  ;;  %1296 = vmatprep.mubr.msk.f32.mxu1 %vm1391_vm0, %v1390_v9 }
 0x14a   :  { %1266 = vmatprep.subr.mxu1 %v1390_v9 }
 0x14b   :  { %1267 = vmatpush3.msra.mxu1 %v940_v59 }
 0x14c   :  { %1268 = vmatprep.subr.mxu1 %v1390_v9 }
 0x14d   :  { %1269 = vmatpush3.msra.mxu1 %v939_v60 }
 0x14e   :  { %1270 = vmatprep.subr.mxu1 %v1390_v9 }
 0x14f   :  { %1271 = vmatpush3.msra.mxu1 %v938_v61 }
 0x150   :  { %1272 = vmatprep.subr.mxu1 %v1390_v9 }
 0x151   :  { %1273 = vmatpush3.msra.mxu1 %v937_v62 }
 0x152   :  { %1274 = vmatprep.subr.mxu1 %v1390_v9 }
 0x153   :  { %1275 = vmatpush3.msra.mxu1 %v936_v63 }
 0x154   :  { %1276 = vmatprep.subr.mxu1 %v1390_v9 }
 0x155   :  { %1277 = vmatpush3.msra.mxu1 %v935_v0 }
 0x156   :  { %1278 = vmatprep.subr.mxu1 %v1390_v9 }
 0x157   :  { %1279 = vmatpush3.msra.mxu1 %v934_v1 }
 0x158   :  { %1280 = vmatprep.subr.mxu1 %v1390_v9 }
 0x159   :  { %1281 = vmatpush3.msra.mxu1 %v933_v2 }
 0x15a   :  { %1282 = vmatprep.subr.mxu1 %v1390_v9 }
 0x15b   :  { %1283 = vmatpush3.msra.mxu1 %v932_v3 }
 0x15c   :  { %1284 = vmatprep.subr.mxu1 %v1390_v9 }
 0x15d   :  { %1285 = vmatpush3.msra.mxu1 %v931_v4 }
 0x15e   :  { %1286 = vmatprep.subr.mxu1 %v1390_v9 }
 0x15f   :  { %1287 = vmatpush3.msra.mxu1 %v930_v5 }
 0x160   :  { %1288 = vmatprep.subr.mxu1 %v1390_v9 }
 0x161   :  { %1289 = vmatpush3.msra.mxu1 %v929_v6 }
 0x162   :  { %1290 = vmatprep.subr.mxu1 %v1390_v9 }
 0x163   :  { %1291 = vmatpush3.msra.mxu1 %v928_v7 }
 0x164   :  { %1292 = vmatprep.subr.mxu1 %v1390_v9 }
 0x165   :  { %1293 = vmatpush3.msra.mxu1 %v927_v8 }
 0x166   :  { %1294 = vmatprep.subr.mxu1 %v1390_v9 }
 0x167   :  { %1295 = vmatpush3.msra.mxu1 %v926_v10 }
 0x208   :  { %v922_v11 = vpop.f32.mrf.mxu1 }
 0x209   :  { %1297 = vmatmul.mubr.f32.vlgmr.msra.gmra.mxu1 %v922_v11 }
 0x20a   :  { %v1263_v12 = vpop.f32.mrf.mxu1 }
 0x2c9   :  { %v1015_v14 = vpop.f32.mrf.mxu1 }
 0x2ca   :  { %v1016_v15 = vadd.f32 %v1122_v13, %v1015_v14 }
 0x2cb   :  { %v1298_v16 = vpop.f32.mrf.mxu1 }
 0x2cc   :  { %v1020_v17 = vsel %vm1019_vm2, %v1016_v15, -inf }
 0x2cd   :  { %1021 = vmax.xlane.f32.xlu0 %v1020_v17 }
 0x356   :  { %v1022_v18 = vpop.xlane.xlu0 %1021 }
 0x357   :  { %v1023_v9 = vsub.f32 %v1016_v15, %v1022_v18 }
 0x359   :  { %v1024_v19 = vmul.f32 1.442695, %v1023_v9 }
 0x35b   :  { %1386 = vpow2.f32 %v1024_v19 }
 0x368   :  { %v1387_v20 = vpop.eup %1386 }
 0x369   :  { %v1026_v21 = vsel %vm1019_vm2, %v1387_v20, 0.0 }
 0x36a   :  { %1027 = vadd.xlane.f32.xlu0 %v1026_v21 }
 0x3f3   :  { %v1028_v22 = vpop.xlane.xlu0 %1027 }
 0x3f4   :  { %1388 = vlog2.f32 %v1028_v22 }
 0x401   :  { %v1389_v23 = vpop.eup %1388 }
 0x402   :  { %v1030_v24 = vmul.f32 0.6931472, %v1389_v23 }
 0x404   :  { %v1031_v25 = vadd.f32 %v1030_v24, %v1022_v18 }
 0x406   :  { %1033 = vst.msk [vmem:[%s1755_s6] sm:$0x3] %vm1032_vm3, %v1031_v25 }

</bundles_post_ra>
